<compile_context>
chip_gen: v7x
topology: tpu7x:2x2x1
jax: 0.10.0
libtpu: 0.0.40
codegen_flags: <defaults>
</compile_context>

<pallas_src>
import functools

import jax
import jax.numpy as jnp
from jax.experimental import pallas as pl
from jax.experimental.pallas import tpu as pltpu


# ----------------------------------------------------------------------------- helpers

def _pick_row_tile(m, max_tile=512, prefer_multi_step=True):
    """Largest multiple-of-8 divisor of m that is <= max_tile.

    If prefer_multi_step, prefer a tile that yields >= 2 grid steps (keeps both
    TensorCores busy on v7x; the ~0.35us/step overhead is negligible at these sizes).
    """
    for t in (512, 256, 128, 64, 32, 16, 8):
        if t > max_tile or m % t != 0:
            continue
        if prefer_multi_step and t >= m:
            continue
        return t
    return m


# ----------------------------------------------------------------------------- kernels

def _mha_ln_kernel(x_ref, kv_ref,
                   wq_ref, bq_ref, wkv_ref, bkv_ref,
                   wo_ref, bo_ref, g_ref, beta_ref,
                   o_ref, kvp_ref, *, num_heads, hid, scale):
    """Fused: Q proj + cached K|V proj + per-head SDPA + out proj + residual + LayerNorm.

    x_ref  : (1, tq, D)   f32 query rows (also the residual input)
    kv_ref : (1, Skv, D)  f32 key/value source rows (resident per batch element)
    w*_ref : bf16 weights; biases / gamma / beta are f32
    kvp_ref: (Skv, 2*hid) bf16 VMEM scratch holding projected [K | V], computed at the
             first q-tile of each batch element and reused for the rest (qi 'arbitrary').
    """
    qi = pl.program_id(1)

    # K and V projections: ONE fused (Skv, D) @ (D, 2*HID) matmul, once per batch elem.
    @pl.when(qi == 0)
    def _():
        kv = kv_ref[0].astype(jnp.bfloat16)
        kvp = jnp.dot(kv, wkv_ref[...], preferred_element_type=jnp.float32)
        kvp_ref[...] = (kvp + bkv_ref[...]).astype(jnp.bfloat16)

    x = x_ref[0]                                                      # (tq, D) f32
    q = jnp.dot(x.astype(jnp.bfloat16), wq_ref[...],
                preferred_element_type=jnp.float32) + bq_ref[...]
    q = (q * scale).astype(jnp.bfloat16)                              # fold softmax scale once

    hd = hid // num_heads
    k = kvp_ref[:, :hid]                                              # (Skv, hid) bf16, aligned view
    v = kvp_ref[:, hid:]                                              # (Skv, hid) bf16, aligned view

    # Per-head attention.  hd is a multiple of 128 in practice (2048/8 = 256 in the
    # reference module), so all lane slices below are free vreg views.
    dims = (((1,), (1,)), ((), ()))                                   # contract head-feature dims
    heads = []
    for h in range(num_heads):
        lo = h * hd
        s = jax.lax.dot_general(q[:, lo:lo + hd], k[:, lo:lo + hd], dims,
                                preferred_element_type=jnp.float32)   # (tq, Skv)
        s = s - jnp.max(s, axis=-1, keepdims=True)
        p = jnp.exp(s)
        p = p * pl.reciprocal(jnp.sum(p, axis=-1, keepdims=True), approx=True)
        heads.append(jnp.dot(p.astype(jnp.bfloat16), v[:, lo:lo + hd],
                             preferred_element_type=jnp.float32))     # (tq, hd)

    # Single full-HID output projection (instead of H narrow-contraction matmuls).
    attn_cat = jnp.concatenate(heads, axis=-1).astype(jnp.bfloat16)   # (tq, hid)
    attn = jnp.dot(attn_cat, wo_ref[...],
                   preferred_element_type=jnp.float32) + bo_ref[...]

    # Residual add + LayerNorm epilogue (f32, eps = 1e-5, PyTorch default).
    z = attn + x
    mu = jnp.mean(z, axis=-1, keepdims=True)
    var = jnp.mean((z - mu) ** 2, axis=-1, keepdims=True)
    zn = (z - mu) * jax.lax.rsqrt(var + 1e-5)
    o_ref[0] = (zn * g_ref[...] + beta_ref[...]).astype(o_ref.dtype)


def _ffn_ln_kernel(x_ref, w1_ref, b1_ref, w2_ref, b2_ref, g_ref, beta_ref, o_ref):
    """Fused: fc2(relu(fc1(x))) -> +residual(x) -> LayerNorm.  bf16 MXU, f32 epilogue."""
    x = x_ref[...]                                                    # (tm, D) f32
    h = jnp.dot(x.astype(jnp.bfloat16), w1_ref[...],
                preferred_element_type=jnp.float32) + b1_ref[...]
    h = jnp.maximum(h, 0.0)
    o = jnp.dot(h.astype(jnp.bfloat16), w2_ref[...],
                preferred_element_type=jnp.float32) + b2_ref[...]
    z = o + x
    mu = jnp.mean(z, axis=-1, keepdims=True)
    var = jnp.mean((z - mu) ** 2, axis=-1, keepdims=True)
    zn = (z - mu) * jax.lax.rsqrt(var + 1e-5)
    o_ref[...] = (zn * g_ref[...] + beta_ref[...]).astype(o_ref.dtype)


# ----------------------------------------------------------------------------- wrappers

def mha_ln(p, q_in, kv_in, gamma, beta):
    """Fused multi-head attention + residual + LayerNorm.

    q_in : (B, Sq, D)  — queries AND residual
    kv_in: (B, Skv, D) — keys/values source
    """
    B, Sq, D = q_in.shape
    Skv = kv_in.shape[1]
    H = p["num_heads"]
    wq, bq = p["wq"]
    wk, bk = p["wk"]
    wv, bv = p["wv"]
    wo, bo = p["wo"]
    HID = wq.shape[1]
    assert HID % H == 0, "hidden_dim must be divisible by num_heads"
    hd = HID // H
    scale = 1.0 / float(hd) ** 0.5
    tq = _pick_row_tile(Sq, max_tile=256, prefer_multi_step=False)
    assert Sq % tq == 0

    # One-time weight prep (would be done at init in a real model): fuse K|V weights and
    # cast weight matrices to bf16 for the MXU (f32 accumulation inside the kernel).
    wkv = jnp.concatenate([wk, wv], axis=1).astype(jnp.bfloat16)      # (D, 2*HID)
    bkv = jnp.concatenate([bk, bv]).reshape(1, 2 * HID)               # f32
    wq_b = wq.astype(jnp.bfloat16)
    wo_b = wo.astype(jnp.bfloat16)

    kernel = functools.partial(_mha_ln_kernel, num_heads=H, hid=HID, scale=scale)
    grid = (B, Sq // tq)
    return pl.pallas_call(
        kernel,
        out_shape=jax.ShapeDtypeStruct((B, Sq, D), q_in.dtype),
        grid=grid,
        in_specs=[
            pl.BlockSpec((1, tq, D), lambda b, qi: (b, qi, 0)),       # queries / residual
            pl.BlockSpec((1, Skv, D), lambda b, qi: (b, 0, 0)),       # K/V source (per-batch)
            pl.BlockSpec((D, HID), lambda b, qi: (0, 0)),             # wq (bf16)
            pl.BlockSpec((1, HID), lambda b, qi: (0, 0)),             # bq
            pl.BlockSpec((D, 2 * HID), lambda b, qi: (0, 0)),         # wk|wv fused (bf16)
            pl.BlockSpec((1, 2 * HID), lambda b, qi: (0, 0)),         # bk|bv fused
            pl.BlockSpec((HID, D), lambda b, qi: (0, 0)),             # wo (bf16)
            pl.BlockSpec((1, D), lambda b, qi: (0, 0)),               # bo
            pl.BlockSpec((1, D), lambda b, qi: (0, 0)),               # ln gamma
            pl.BlockSpec((1, D), lambda b, qi: (0, 0)),               # ln beta
        ],
        out_specs=pl.BlockSpec((1, tq, D), lambda b, qi: (b, qi, 0)),
        scratch_shapes=[pltpu.VMEM((Skv, 2 * HID), jnp.bfloat16)],    # projected [K | V]
        compiler_params=pltpu.CompilerParams(
            # batch axis feeds both TCs on v7x; q-tile axis must be 'arbitrary' because
            # the projected-K/V scratch is carried across q-tiles of one batch element.
            dimension_semantics=("parallel", "arbitrary")),
    )(q_in, kv_in,
      wq_b, bq.reshape(1, HID), wkv, bkv, wo_b, bo.reshape(1, D),
      gamma.reshape(1, D), beta.reshape(1, D))


def ffn_ln(x, w1, b1, w2, b2, gamma, beta):
    """Fused LayerNorm(fc2(relu(fc1(x))) + x).  x: (M, D)."""
    M, D = x.shape
    F = w1.shape[1]
    tm = _pick_row_tile(M, max_tile=512, prefer_multi_step=True)
    assert M % tm == 0
    w1_b = w1.astype(jnp.bfloat16)
    w2_b = w2.astype(jnp.bfloat16)
    # TODO(synk): for very large F, add a reduction grid axis over F with an f32
    # accumulator scratch so w1/w2/h stay under v7x's 64 MiB VMEM with double buffering.
    return pl.pallas_call(
        _ffn_ln_kernel,
        out_shape=jax.ShapeDtypeStruct((M, D), x.dtype),
        grid=(M // tm,),
        in_specs=[
            pl.BlockSpec((tm, D), lambda i: (i, 0)),
            pl.BlockSpec((D, F), lambda i: (0, 0)),
            pl.BlockSpec((1, F), lambda i: (0, 0)),
            pl.BlockSpec((F, D), lambda i: (0, 0)),
            pl.BlockSpec((1, D), lambda i: (0, 0)),
            pl.BlockSpec((1, D), lambda i: (0, 0)),
            pl.BlockSpec((1, D), lambda i: (0, 0)),
        ],
        out_specs=pl.BlockSpec((tm, D), lambda i: (i, 0)),
        compiler_params=pltpu.CompilerParams(dimension_semantics=("parallel",)),
    )(x, w1_b, b1.reshape(1, F), w2_b, b2.reshape(1, D),
      gamma.reshape(1, D), beta.reshape(1, D))


# ----------------------------------------------------------------------------- model

def init_linear_params(key, in_dim, out_dim):
    w = jax.random.normal(key, (in_dim, out_dim), jnp.float32) * 0.02
    b = jnp.zeros((out_dim,), jnp.float32)
    return w, b


def init_mha_params(key, num_heads, input_dim, hidden_dim, output_dim):
    kq, kk, kv, ko = jax.random.split(key, 4)
    return {
        "wq": init_linear_params(kq, input_dim, hidden_dim),
        "wk": init_linear_params(kk, input_dim, hidden_dim),
        "wv": init_linear_params(kv, input_dim, hidden_dim),
        "wo": init_linear_params(ko, hidden_dim, output_dim),
        "num_heads": num_heads,
    }


def init_decoder_params(key, num_heads, input_dim, attn_hidden_dim, ffn_hidden_dim):
    ks = jax.random.split(key, 4)
    return {
        "self_attn": init_mha_params(ks[0], num_heads, input_dim, attn_hidden_dim, input_dim),
        "encdec_attn": init_mha_params(ks[1], num_heads, input_dim, attn_hidden_dim, input_dim),
        "ln1": (jnp.ones((input_dim,), jnp.float32), jnp.zeros((input_dim,), jnp.float32)),
        "ln2": (jnp.ones((input_dim,), jnp.float32), jnp.zeros((input_dim,), jnp.float32)),
        # ln3 mirrors the reference module but is intentionally unused: the reference
        # forward() reuses layer_norm2 for the final residual LN.
        "ln3": (jnp.ones((input_dim,), jnp.float32), jnp.zeros((input_dim,), jnp.float32)),
        "fc1": init_linear_params(ks[2], input_dim, ffn_hidden_dim),
        "fc2": init_linear_params(ks[3], ffn_hidden_dim, input_dim),
    }


def decoder_forward(params, y, encoder_output):
    """y: (B, Sy, D), encoder_output: (B, Se, D) -> (B, Sy, D)"""
    B, Sy, D = y.shape

    # self attention + residual + LN1 (one fused kernel)
    z = mha_ln(params["self_attn"], y, y, *params["ln1"])

    # enc-dec attention + residual + LN2 (one fused kernel)
    z2 = mha_ln(params["encdec_attn"], z, encoder_output, *params["ln2"])

    # position-wise FFN + residual + LN2-again (one fused kernel; matches the reference)
    out = ffn_ln(z2.reshape(B * Sy, D), *params["fc1"], *params["fc2"], *params["ln2"])
    return out.reshape(B, Sy, D)


# ----------------------------------------------------------------------------- pure-JAX reference

def _ln_ref(x, g, b):
    mu = jnp.mean(x, -1, keepdims=True)
    var = jnp.mean((x - mu) ** 2, -1, keepdims=True)
    return (x - mu) * jax.lax.rsqrt(var + 1e-5) * g + b


def _mha_ref(p, q_in, kv_in):
    H = p["num_heads"]
    wq, bq = p["wq"]; wk, bk = p["wk"]; wv, bv = p["wv"]; wo, bo = p["wo"]
    B, Sq, D = q_in.shape
    Skv = kv_in.shape[1]
    HID = wq.shape[1]
    hd = HID // H
    hp = jax.lax.Precision.HIGHEST
    q = (jnp.einsum("bsd,dh->bsh", q_in, wq, precision=hp) + bq).reshape(B, Sq, H, hd)
    k = (jnp.einsum("bsd,dh->bsh", kv_in, wk, precision=hp) + bk).reshape(B, Skv, H, hd)
    v = (jnp.einsum("bsd,dh->bsh", kv_in, wv, precision=hp) + bv).reshape(B, Skv, H, hd)
    s = jnp.einsum("bqhd,bkhd->bhqk", q, k, precision=hp) * (1.0 / float(hd) ** 0.5)
    p_ = jax.nn.softmax(s, axis=-1)
    o = jnp.einsum("bhqk,bkhd->bqhd", p_, v, precision=hp).reshape(B, Sq, HID)
    return jnp.einsum("bsh,hd->bsd", o, wo, precision=hp) + bo


def _decoder_ref(params, y, enc):
    hp = jax.lax.Precision.HIGHEST
    z = _ln_ref(y + _mha_ref(params["self_attn"], y, y), *params["ln1"])
    z2 = _ln_ref(_mha_ref(params["encdec_attn"], z, enc) + z, *params["ln2"])
    h = jnp.maximum(
        jnp.einsum("bsd,df->bsf", z2, params["fc1"][0], precision=hp) + params["fc1"][1], 0.0)
    out = jnp.einsum("bsf,fd->bsd", h, params["fc2"][0], precision=hp) + params["fc2"][1]
    return _ln_ref(out + z2, *params["ln2"])


# ----------------------------------------------------------------------------- main

if __name__ == "__main__":
    # Small, lane-dense shapes consistent with the module (reference defaults are
    # input_dim=256, hidden_dim=2048, heads=8 -> head_dim=256).  Scaled down keeping the
    # same structure: last dims multiples of 128, head_dim a multiple of 128, seq = 128
    # so q/row tiles of 128 fill the MXU and the batch axis gives 2 parallel units.
    B, Sy, Se = 2, 128, 128      # batch, decoder seq len, encoder seq len
    D = 128                      # input_dim
    H = 2                        # num_heads
    ATTN_HIDDEN = 256            # attention hidden dim (head_dim = 128)
    FFN_HIDDEN = 256             # feed-forward hidden dim

    key = jax.random.PRNGKey(0)
    kp, ky, ke = jax.random.split(key, 3)

    params = init_decoder_params(kp, H, D, ATTN_HIDDEN, FFN_HIDDEN)
    y = jax.random.normal(ky, (B, Sy, D), jnp.float32)
    encoder_output = jax.random.normal(ke, (B, Se, D), jnp.float32)

    out = decoder_forward(params, y, encoder_output)
    out = jax.block_until_ready(out)

    assert out.shape == (B, Sy, D), out.shape
    assert bool(jnp.all(jnp.isfinite(out)))

    # The kernels run the matmuls with bf16 MXU inputs (f32 accumulation) and use an
    # approximate reciprocal in the softmax; the reference is full-f32 HIGHEST precision,
    # so a slightly looser tolerance is used.
    ref = jax.block_until_ready(_decoder_ref(params, y, encoder_output))
    max_err = float(jnp.max(jnp.abs(out - ref)))
    assert max_err < 5e-2, f"max abs error vs reference: {max_err}"

    print("KERNEL_OK")
</pallas_src>

<mosaic_0001>
module attributes {stable_mosaic.version = 11 : i64} {
  func.func @_mha_ln_kernel(%arg0: i32, %arg1: i32, %arg2: memref<1x128x128xf32, #tpu.memory_space<vmem>>, %arg3: memref<1x128x128xf32, #tpu.memory_space<vmem>>, %arg4: memref<128x256xbf16, #tpu.memory_space<vmem>>, %arg5: memref<1x256xf32, #tpu.memory_space<vmem>>, %arg6: memref<128x512xbf16, #tpu.memory_space<vmem>>, %arg7: memref<1x512xf32, #tpu.memory_space<vmem>>, %arg8: memref<256x128xbf16, #tpu.memory_space<vmem>>, %arg9: memref<1x128xf32, #tpu.memory_space<vmem>>, %arg10: memref<1x128xf32, #tpu.memory_space<vmem>>, %arg11: memref<1x128xf32, #tpu.memory_space<vmem>>, %arg12: memref<1x128x128xf32, #tpu.memory_space<vmem>>, %arg13: memref<128x512xbf16, #tpu.memory_space<vmem>>) attributes {dimension_semantics = [#tpu.dimension_semantics<parallel>, #tpu.dimension_semantics<arbitrary>], iteration_bounds = array<i64: 2, 1>, scalar_prefetch = 0 : i64, scratch_operands = 1 : i64, tpu.core_type = #tpu.core_type<tc>, window_params = [{transform_indices = @transform_0, window_bounds = array<i64: 1, 128, 128>}, {transform_indices = @transform_1, window_bounds = array<i64: 1, 128, 128>}, {pipeline_mode = #tpu.pipeline_mode<synchronous>, transform_indices = @transform_2, window_bounds = array<i64: 128, 256>}, {pipeline_mode = #tpu.pipeline_mode<synchronous>, transform_indices = @transform_3, window_bounds = array<i64: 1, 256>}, {pipeline_mode = #tpu.pipeline_mode<synchronous>, transform_indices = @transform_4, window_bounds = array<i64: 128, 512>}, {pipeline_mode = #tpu.pipeline_mode<synchronous>, transform_indices = @transform_5, window_bounds = array<i64: 1, 512>}, {pipeline_mode = #tpu.pipeline_mode<synchronous>, transform_indices = @transform_6, window_bounds = array<i64: 256, 128>}, {pipeline_mode = #tpu.pipeline_mode<synchronous>, transform_indices = @transform_7, window_bounds = array<i64: 1, 128>}, {pipeline_mode = #tpu.pipeline_mode<synchronous>, transform_indices = @transform_8, window_bounds = array<i64: 1, 128>}, {pipeline_mode = #tpu.pipeline_mode<synchronous>, transform_indices = @transform_9, window_bounds = array<i64: 1, 128>}, {transform_indices = @transform_10, window_bounds = array<i64: 1, 128, 128>}]} {
    %c0_i32 = arith.constant 0 : i32
    %0 = arith.cmpi eq, %arg1, %c0_i32 : i32
    %1 = arith.extui %0 : i1 to i32
    %c0_i32_0 = arith.constant 0 : i32
    %2 = arith.cmpi ne, %1, %c0_i32_0 : i32
    scf.if %2 {
      %c0_36 = arith.constant 0 : index
      %c0_37 = arith.constant 0 : index
      %c0_38 = arith.constant 0 : index
      %83 = vector.load %arg3[%c0_36, %c0_37, %c0_38] : memref<1x128x128xf32, #tpu.memory_space<vmem>>, vector<1x128x128xf32>
      %84 = vector.shape_cast %83 : vector<1x128x128xf32> to vector<128x128xf32>
      %85 = arith.truncf %84 : vector<128x128xf32> to vector<128x128xbf16>
      %c0_39 = arith.constant 0 : index
      %c0_40 = arith.constant 0 : index
      %86 = vector.load %arg6[%c0_39, %c0_40] : memref<128x512xbf16, #tpu.memory_space<vmem>>, vector<128x512xbf16>
      %cst_41 = arith.constant dense<0.000000e+00> : vector<128x512xf32>
      %87 = tpu.matmul %85, %86, %cst_41 {dimension_numbers = #tpu.dot_dimension_numbers<[1], [0], [0], [1], [0, 0, 1, 1], [], []>} : vector<128x128xbf16>, vector<128x512xbf16>, vector<128x512xf32> -> vector<128x512xf32>
      %c0_42 = arith.constant 0 : index
      %c0_43 = arith.constant 0 : index
      %88 = vector.load %arg7[%c0_42, %c0_43] : memref<1x512xf32, #tpu.memory_space<vmem>>, vector<1x512xf32>
      %89 = vector.broadcast %88 : vector<1x512xf32> to vector<128x512xf32>
      %90 = arith.addf %87, %89 : vector<128x512xf32>
      %91 = arith.truncf %90 : vector<128x512xf32> to vector<128x512xbf16>
      %c0_44 = arith.constant 0 : index
      %c0_45 = arith.constant 0 : index
      %92 = vector.load %arg13[%c0_44, %c0_45] : memref<128x512xbf16, #tpu.memory_space<vmem>>, vector<128x512xbf16>
      tpu.vector_store %arg13[%c0_44, %c0_45], %91 {strides = array<i32>} : memref<128x512xbf16, #tpu.memory_space<vmem>>, vector<128x512xbf16>,
    } else {
    }
    %c0 = arith.constant 0 : index
    %c0_1 = arith.constant 0 : index
    %c0_2 = arith.constant 0 : index
    %3 = vector.load %arg2[%c0, %c0_1, %c0_2] : memref<1x128x128xf32, #tpu.memory_space<vmem>>, vector<1x128x128xf32>
    %4 = vector.shape_cast %3 : vector<1x128x128xf32> to vector<128x128xf32>
    %5 = arith.truncf %4 : vector<128x128xf32> to vector<128x128xbf16>
    %c0_3 = arith.constant 0 : index
    %c0_4 = arith.constant 0 : index
    %6 = vector.load %arg4[%c0_3, %c0_4] : memref<128x256xbf16, #tpu.memory_space<vmem>>, vector<128x256xbf16>
    %cst = arith.constant dense<0.000000e+00> : vector<128x256xf32>
    %7 = tpu.matmul %5, %6, %cst {dimension_numbers = #tpu.dot_dimension_numbers<[1], [0], [0], [1], [0, 0, 1, 1], [], []>} : vector<128x128xbf16>, vector<128x256xbf16>, vector<128x256xf32> -> vector<128x256xf32>
    %c0_5 = arith.constant 0 : index
    %c0_6 = arith.constant 0 : index
    %8 = vector.load %arg5[%c0_5, %c0_6] : memref<1x256xf32, #tpu.memory_space<vmem>>, vector<1x256xf32>
    %9 = vector.broadcast %8 : vector<1x256xf32> to vector<128x256xf32>
    %10 = arith.addf %7, %9 : vector<128x256xf32>
    %cst_7 = arith.constant 0.0883883461 : f32
    %11 = vector.broadcast %cst_7 : f32 to vector<128x256xf32>
    %12 = arith.mulf %10, %11 : vector<128x256xf32>
    %13 = arith.truncf %12 : vector<128x256xf32> to vector<128x256xbf16>
    %c0_8 = arith.constant 0 : index
    %c0_9 = arith.constant 0 : index
    %14 = vector.load %arg13[%c0_8, %c0_9] : memref<128x512xbf16, #tpu.memory_space<vmem>>, vector<128x256xbf16>
    %c0_10 = arith.constant 0 : index
    %c256 = arith.constant 256 : index
    %15 = vector.load %arg13[%c0_10, %c256] : memref<128x512xbf16, #tpu.memory_space<vmem>>, vector<128x256xbf16>
    %16 = vector.extract_strided_slice %13 {offsets = [0, 0], sizes = [128, 128], strides = [1, 1]} : vector<128x256xbf16> to vector<128x128xbf16>
    %17 = vector.extract_strided_slice %14 {offsets = [0, 0], sizes = [128, 128], strides = [1, 1]} : vector<128x256xbf16> to vector<128x128xbf16>
    %cst_11 = arith.constant dense<0.000000e+00> : vector<128x128xf32>
    %18 = tpu.matmul %16, %17, %cst_11 {dimension_numbers = #tpu.dot_dimension_numbers<[1], [1], [0], [0], [0, 0, 1, 0], [], []>} : vector<128x128xbf16>, vector<128x128xbf16>, vector<128x128xf32> -> vector<128x128xf32>
    %cst_12 = arith.constant dense<0xFF800000> : vector<128xf32>
    %19 = vector.multi_reduction <maximumf>, %18, %cst_12 [1] : vector<128x128xf32> to vector<128xf32>
    %20 = vector.shape_cast %19 : vector<128xf32> to vector<128x1xf32>
    %21 = vector.broadcast %20 : vector<128x1xf32> to vector<128x128xf32>
    %22 = arith.subf %18, %21 : vector<128x128xf32>
    %23 = math.exp %22 : vector<128x128xf32>
    %cst_13 = arith.constant dense<0.000000e+00> : vector<128xf32>
    %24 = vector.multi_reduction <add>, %23, %cst_13 [1] : vector<128x128xf32> to vector<128xf32>
    %25 = vector.shape_cast %24 : vector<128xf32> to vector<128x1xf32>
    %26 = tpu.reciprocal %25 {approx = true} : vector<128x1xf32> -> vector<128x1xf32>
    %27 = vector.broadcast %26 : vector<128x1xf32> to vector<128x128xf32>
    %28 = arith.mulf %23, %27 : vector<128x128xf32>
    %29 = arith.truncf %28 : vector<128x128xf32> to vector<128x128xbf16>
    %30 = vector.extract_strided_slice %15 {offsets = [0, 0], sizes = [128, 128], strides = [1, 1]} : vector<128x256xbf16> to vector<128x128xbf16>
    %cst_14 = arith.constant dense<0.000000e+00> : vector<128x128xf32>
    %31 = tpu.matmul %29, %30, %cst_14 {dimension_numbers = #tpu.dot_dimension_numbers<[1], [0], [0], [1], [0, 0, 1, 1], [], []>} : vector<128x128xbf16>, vector<128x128xbf16>, vector<128x128xf32> -> vector<128x128xf32>
    %32 = vector.extract_strided_slice %13 {offsets = [0, 128], sizes = [128, 128], strides = [1, 1]} : vector<128x256xbf16> to vector<128x128xbf16>
    %33 = vector.extract_strided_slice %14 {offsets = [0, 128], sizes = [128, 128], strides = [1, 1]} : vector<128x256xbf16> to vector<128x128xbf16>
    %cst_15 = arith.constant dense<0.000000e+00> : vector<128x128xf32>
    %34 = tpu.matmul %32, %33, %cst_15 {dimension_numbers = #tpu.dot_dimension_numbers<[1], [1], [0], [0], [0, 0, 1, 0], [], []>} : vector<128x128xbf16>, vector<128x128xbf16>, vector<128x128xf32> -> vector<128x128xf32>
    %cst_16 = arith.constant dense<0xFF800000> : vector<128xf32>
    %35 = vector.multi_reduction <maximumf>, %34, %cst_16 [1] : vector<128x128xf32> to vector<128xf32>
    %36 = vector.shape_cast %35 : vector<128xf32> to vector<128x1xf32>
    %37 = vector.broadcast %36 : vector<128x1xf32> to vector<128x128xf32>
    %38 = arith.subf %34, %37 : vector<128x128xf32>
    %39 = math.exp %38 : vector<128x128xf32>
    %cst_17 = arith.constant dense<0.000000e+00> : vector<128xf32>
    %40 = vector.multi_reduction <add>, %39, %cst_17 [1] : vector<128x128xf32> to vector<128xf32>
    %41 = vector.shape_cast %40 : vector<128xf32> to vector<128x1xf32>
    %42 = tpu.reciprocal %41 {approx = true} : vector<128x1xf32> -> vector<128x1xf32>
    %43 = vector.broadcast %42 : vector<128x1xf32> to vector<128x128xf32>
    %44 = arith.mulf %39, %43 : vector<128x128xf32>
    %45 = arith.truncf %44 : vector<128x128xf32> to vector<128x128xbf16>
    %46 = vector.extract_strided_slice %15 {offsets = [0, 128], sizes = [128, 128], strides = [1, 1]} : vector<128x256xbf16> to vector<128x128xbf16>
    %cst_18 = arith.constant dense<0.000000e+00> : vector<128x128xf32>
    %47 = tpu.matmul %45, %46, %cst_18 {dimension_numbers = #tpu.dot_dimension_numbers<[1], [0], [0], [1], [0, 0, 1, 1], [], []>} : vector<128x128xbf16>, vector<128x128xbf16>, vector<128x128xf32> -> vector<128x128xf32>
    %48 = tpu.concatenate %31, %47 in 1 : vector<128x128xf32>, vector<128x128xf32> -> vector<128x256xf32>
    %49 = arith.truncf %48 : vector<128x256xf32> to vector<128x256xbf16>
    %c0_19 = arith.constant 0 : index
    %c0_20 = arith.constant 0 : index
    %50 = vector.load %arg8[%c0_19, %c0_20] : memref<256x128xbf16, #tpu.memory_space<vmem>>, vector<256x128xbf16>
    %cst_21 = arith.constant dense<0.000000e+00> : vector<128x128xf32>
    %51 = tpu.matmul %49, %50, %cst_21 {dimension_numbers = #tpu.dot_dimension_numbers<[1], [0], [0], [1], [0, 0, 1, 1], [], []>} : vector<128x256xbf16>, vector<256x128xbf16>, vector<128x128xf32> -> vector<128x128xf32>
    %c0_22 = arith.constant 0 : index
    %c0_23 = arith.constant 0 : index
    %52 = vector.load %arg9[%c0_22, %c0_23] : memref<1x128xf32, #tpu.memory_space<vmem>>, vector<1x128xf32>
    %53 = vector.broadcast %52 : vector<1x128xf32> to vector<128x128xf32>
    %54 = arith.addf %51, %53 : vector<128x128xf32>
    %55 = arith.addf %54, %4 : vector<128x128xf32>
    %cst_24 = arith.constant dense<0.000000e+00> : vector<128xf32>
    %56 = vector.multi_reduction <add>, %55, %cst_24 [1] : vector<128x128xf32> to vector<128xf32>
    %57 = vector.shape_cast %56 : vector<128xf32> to vector<128x1xf32>
    %cst_25 = arith.constant 1.280000e+02 : f32
    %58 = vector.broadcast %cst_25 : f32 to vector<128x1xf32>
    %59 = arith.divf %57, %58 : vector<128x1xf32>
    %60 = vector.broadcast %59 : vector<128x1xf32> to vector<128x128xf32>
    %61 = arith.subf %55, %60 : vector<128x128xf32>
    %62 = arith.mulf %61, %61 : vector<128x128xf32>
    %cst_26 = arith.constant dense<0.000000e+00> : vector<128xf32>
    %63 = vector.multi_reduction <add>, %62, %cst_26 [1] : vector<128x128xf32> to vector<128xf32>
    %64 = vector.shape_cast %63 : vector<128xf32> to vector<128x1xf32>
    %cst_27 = arith.constant 1.280000e+02 : f32
    %65 = vector.broadcast %cst_27 : f32 to vector<128x1xf32>
    %66 = arith.divf %64, %65 : vector<128x1xf32>
    %67 = vector.broadcast %59 : vector<128x1xf32> to vector<128x128xf32>
    %68 = arith.subf %55, %67 : vector<128x128xf32>
    %cst_28 = arith.constant 9.99999974E-6 : f32
    %69 = vector.broadcast %cst_28 : f32 to vector<128x1xf32>
    %70 = arith.addf %66, %69 : vector<128x1xf32>
    %71 = math.rsqrt %70 : vector<128x1xf32>
    %72 = vector.broadcast %71 : vector<128x1xf32> to vector<128x128xf32>
    %73 = arith.mulf %68, %72 : vector<128x128xf32>
    %c0_29 = arith.constant 0 : index
    %c0_30 = arith.constant 0 : index
    %74 = vector.load %arg10[%c0_29, %c0_30] : memref<1x128xf32, #tpu.memory_space<vmem>>, vector<1x128xf32>
    %75 = vector.broadcast %74 : vector<1x128xf32> to vector<128x128xf32>
    %76 = arith.mulf %73, %75 : vector<128x128xf32>
    %c0_31 = arith.constant 0 : index
    %c0_32 = arith.constant 0 : index
    %77 = vector.load %arg11[%c0_31, %c0_32] : memref<1x128xf32, #tpu.memory_space<vmem>>, vector<1x128xf32>
    %78 = vector.broadcast %77 : vector<1x128xf32> to vector<128x128xf32>
    %79 = arith.addf %76, %78 : vector<128x128xf32>
    %c0_33 = arith.constant 0 : index
    %c0_34 = arith.constant 0 : index
    %c0_35 = arith.constant 0 : index
    %80 = vector.load %arg12[%c0_33, %c0_34, %c0_35] : memref<1x128x128xf32, #tpu.memory_space<vmem>>, vector<1x128x128xf32>
    %81 = vector.shape_cast %80 : vector<1x128x128xf32> to vector<128x128xf32>
    %82 = vector.shape_cast %79 : vector<128x128xf32> to vector<1x128x128xf32>
    tpu.vector_store %arg12[%c0_33, %c0_34, %c0_35], %82 {strides = array<i32>} : memref<1x128x128xf32, #tpu.memory_space<vmem>>, vector<1x128x128xf32>,
    return
  }
  func.func @transform_0(%arg0: i32, %arg1: i32) -> (i32, i32, i32) {
    %c0_i32 = arith.constant 0 : i32
    %c0_i32_0 = arith.constant 0 : i32
    return %arg0, %arg1, %c0_i32 : i32, i32, i32
  }
  func.func @transform_1(%arg0: i32, %arg1: i32) -> (i32, i32, i32) {
    %c0_i32 = arith.constant 0 : i32
    %c0_i32_0 = arith.constant 0 : i32
    %c0_i32_1 = arith.constant 0 : i32
    return %arg0, %c0_i32, %c0_i32_0 : i32, i32, i32
  }
  func.func @transform_2(%arg0: i32, %arg1: i32) -> (i32, i32) {
    %c0_i32 = arith.constant 0 : i32
    %c0_i32_0 = arith.constant 0 : i32
    %c0_i32_1 = arith.constant 0 : i32
    return %c0_i32, %c0_i32_0 : i32, i32
  }
  func.func @transform_3(%arg0: i32, %arg1: i32) -> (i32, i32) {
    %c0_i32 = arith.constant 0 : i32
    %c0_i32_0 = arith.constant 0 : i32
    %c0_i32_1 = arith.constant 0 : i32
    return %c0_i32, %c0_i32_0 : i32, i32
  }
  func.func @transform_4(%arg0: i32, %arg1: i32) -> (i32, i32) {
    %c0_i32 = arith.constant 0 : i32
    %c0_i32_0 = arith.constant 0 : i32
    %c0_i32_1 = arith.constant 0 : i32
    return %c0_i32, %c0_i32_0 : i32, i32
  }
  func.func @transform_5(%arg0: i32, %arg1: i32) -> (i32, i32) {
    %c0_i32 = arith.constant 0 : i32
    %c0_i32_0 = arith.constant 0 : i32
    %c0_i32_1 = arith.constant 0 : i32
    return %c0_i32, %c0_i32_0 : i32, i32
  }
  func.func @transform_6(%arg0: i32, %arg1: i32) -> (i32, i32) {
    %c0_i32 = arith.constant 0 : i32
    %c0_i32_0 = arith.constant 0 : i32
    %c0_i32_1 = arith.constant 0 : i32
    return %c0_i32, %c0_i32_0 : i32, i32
  }
  func.func @transform_7(%arg0: i32, %arg1: i32) -> (i32, i32) {
    %c0_i32 = arith.constant 0 : i32
    %c0_i32_0 = arith.constant 0 : i32
    %c0_i32_1 = arith.constant 0 : i32
    return %c0_i32, %c0_i32_0 : i32, i32
  }
  func.func @transform_8(%arg0: i32, %arg1: i32) -> (i32, i32) {
    %c0_i32 = arith.constant 0 : i32
    %c0_i32_0 = arith.constant 0 : i32
    %c0_i32_1 = arith.constant 0 : i32
    return %c0_i32, %c0_i32_0 : i32, i32
  }
  func.func @transform_9(%arg0: i32, %arg1: i32) -> (i32, i32) {
    %c0_i32 = arith.constant 0 : i32
    %c0_i32_0 = arith.constant 0 : i32
    %c0_i32_1 = arith.constant 0 : i32
    return %c0_i32, %c0_i32_0 : i32, i32
  }
  func.func @transform_10(%arg0: i32, %arg1: i32) -> (i32, i32, i32) {
    %c0_i32 = arith.constant 0 : i32
    %c0_i32_0 = arith.constant 0 : i32
    return %arg0, %arg1, %c0_i32 : i32, i32, i32
  }
}

</mosaic_0001>

<bundles_post_ra>
// kernel: tpu_custom_call.1
= control target key start
LH: loop header
LB: loop body
LE: loop exit
PB: predicated region body
PF: predicated region fallthrough
CT: control target
= control target key end

     0   :  { %s4903_s0 = inlined_call_operand.hbm [shape: f32[2,128,128], index: 0, kind: input, shape index: {}]   ;;  %s4904_s1 = inlined_call_operand.hbm [shape: f32[2,128,128], index: 1, kind: input, shape index: {}]   ;;  %s4905_s2 = inlined_call_operand.hbm [shape: bf16[128,256], index: 2, kind: input, shape index: {}]   ;;  %s4906_s3 = inlined_call_operand.vmem [shape: f32[1,256], index: 3, kind: input, shape index: {}]   ;;  %s4907_s4 = inlined_call_operand.hbm [shape: bf16[128,512], index: 4, kind: input, shape index: {}]   ;;  %s4908_s5 = inlined_call_operand.vmem [shape: f32[1,512], index: 5, kind: input, shape index: {}]   ;;  %s4909_s6 = inlined_call_operand.hbm [shape: bf16[256,128], index: 6, kind: input, shape index: {}]   ;;  %s4910_s7 = inlined_call_operand.vmem [shape: f32[1,128], index: 7, kind: input, shape index: {}]   ;;  %s4911_s8 = inlined_call_operand.vmem [shape: f32[1,128], index: 8, kind: input, shape index: {}]   ;;  %s4912_s9 = inlined_call_operand.vmem [shape: f32[1,128], index: 9, kind: input, shape index: {}]   ;;  %s4913_s10 = inlined_call_operand.hbm [shape: f32[2,128,128], index: 10, kind: output, shape index: {}]  }
   0x1   :  { %4924 = sst [smem:[#allocation21_spill]] %s4903_s0 }
   0x2   :  { %4925 = sst [smem:[#allocation22_spill]] %s4905_s2 }
   0x3   :  { %4926 = sst [smem:[#allocation23_spill]] %s4907_s4 }
   0x4   :  { %4927 = sst [smem:[#allocation24_spill]] %s4909_s6 }
   0x5   :  { %4928 = sst [smem:[#allocation25_spill]] %s4912_s9 }
   0x6   :  { %4929 = sst [smem:[#allocation26_spill]] %s4913_s10 }
   0x7   :  { %15 = vsyncpa [#allocation4], 0 }
   0x8   :  { %17 = vsyncpa [#allocation4 + $0x1], 0 }
   0x9   :  { %18 = vsyncpa [#allocation7], 0 }
   0xa   :  { %20 = vsyncpa [#allocation7 + $0x1], 0 }
   0xb   :  { %21 = vsyncpa [#allocation10], 0 }
   0xc   :  { %22 = vsyncpa [#allocation5], 0 }
   0xd   :  { %24 = vsyncpa [#allocation5 + $0x1], 0  ;;  %s3736_s13 = smov 0   ;;  %s3738_s14 = smov 0  }
   0xe   :  { %s3740_s15 = smov 0   ;;  %s3742_s16 = smov 0  }
   0xf   :  { %s3744_s17 = smov 0   ;;  %s3746_s18 = smov 0  }
  0x10 LB: > { %4930 = sst [smem:[#allocation18_spill]] %s3644_s13  ;;  %s3767_s19 = sadd.s32 4294967295, %s3664_s18   ;;  %s3664_s18 = sphi %s3746_s18, %s30_s18   ;;  %s3660_s17 = sphi %s3744_s17, %s4964_s17   ;;  %s3656_s16 = sphi %s3742_s16, %s4963_s16   ;;  %s3652_s15 = sphi %s3740_s15, %s4962_s15   ;;  %s3648_s14 = sphi %s3738_s14, %s4961_s14   ;;  %s3644_s13 = sphi %s3736_s13, %s4960_s13  }
  0x11   : > { %4931 = sst [smem:[#allocation19_spill]] %s3656_s16  ;;  %s2689_s20 = sadd.s32 4294967294, %s3664_s18  }
  0x12   : > { %p64_p0 = scmp.ne.s32.totalorder %s3648_s14, %s3644_s13  ;;  %p4915_p1 = scmp.eq.s32.totalorder %s3767_s19, 0 }
  0x13   : > { %p290_p3 = scmp.eq.s32.totalorder %s2689_s20, 1  ;;  %p2690_p5 = scmp.ge.s32.totalorder %s3664_s18, 1 }
  0x14   : > { %p3776_p4 = por %p4915_p1, %p64_p0  ;;  %p297_p7 = scmp.lt.s32.totalorder %s3664_s18, 3 }
  0x15   : > { %p3781_p6 = por %p290_p3, %p64_p0  ;;  %s3666_s24 = smov [#allocation8]  }
  0x16   : > { %s4932_s21 = scalar_select %p3776_p4, 1, 0 }
  0x17   : > { %s4933_s22 = scalar_select %p3781_p6, 1, 0 }
  0x18   : > { %p3786_p8 = pnand %p2690_p5, %p297_p7  ;;  %s309_s25 = sshll.u32 %s3666_s24, 4  ;;  %s3790_s25 = int_to_ptr.vmem [resolvable:$true] %s309_s25 }
  0x19   : > { %4934 = sst [smem:[#allocation20_spill]] %s4933_s22  ;;  %s3667_s27 = smov [#allocation9]  }
  0x1a   : > { %s4935_s23 = scalar_select %p3786_p8, 1, 0 }
  0x1b   : > { %p3073_p9 = pneg %p3786_p8  ;;  %s325_s28 = sshll.u32 %s3667_s27, 4  ;;  %s3801_s28 = int_to_ptr.vmem [resolvable:$true] %s325_s28 }
  0x1c   : > { %s4937_s2 = sld [smem:[#allocation22_spill]] }
  0x1d   : > { %p3797_p11 = pnand %p3073_p9, %p4915_p1 }
  0x1f   : > { %p3811_p13 = pneg %p3797_p11 }
  0x22   : > { %s3426_s11 = scalar_lea.hbm %s4937_s2, 2048 }
  0x23   : > { %p3427_p12 = scmp.ne.s32.totalorder %s4937_s2, %s3426_s11  ;;  %p3433_p5 = scmp.lt.u32.totalorder %s3426_s11, %s4937_s2 }
  0x25   : > { %p3429_p0 = pnand %p3811_p13, %p3427_p12 }
  0x27   : > { %p3430_p3 = pneg %p3429_p0 }
  0x29   : > { %p3435_p7 = pnand %p3433_p5, %p3430_p3 }
  0x2b   : > { %3438 = shalt.err (!%p3435_p7)
}
  0x2c   : > { %s3439_s29 = scalar_lea.vmem %s3790_s25, 2048  ;;  %p3447_p2 = scmp.lt.s32.totalorder %s3790_s25, %s3790_s25 }
  0x2d   : > { %p3440_p9 = scmp.ne.s32.totalorder %s3790_s25, %s3439_s29  ;;  %p3448_p6 = scmp.lt.s32.totalorder %s3439_s29, %s3439_s29 }
  0x2f   : > { %p3442_p10 = pnand %p3440_p9, %p3811_p13  ;;  %p3449_p12 = por %p3448_p6, %p3447_p2 }
  0x31   : > { %p3443_p1 = pneg %p3442_p10 }
  0x33   : > { %p3450_p0 = pnand %p3449_p12, %p3443_p1 }
  0x35   : > { %3453 = shalt.err (!%p3450_p0)
}
  0x36   : > { %s4918_s30 = smov 128   ;;  %s4920_s22 = smov 8  }
  0x37   : > { %3076 = dma.hbm_to_vmem [thread:$0]  (!%p3797_p11), %s4937_s2, 2048, %s3790_s25, [#allocation7], %s4918_s30, %s4918_s30, %s4920_s22  }
  0x38   : > { %s4939_s4 = sld [smem:[#allocation23_spill]] }
  0x3e   : > { %s3454_s29 = scalar_lea.hbm %s4939_s4, 4096 }
  0x3f   : > { %p3455_p1 = scmp.ne.s32.totalorder %s4939_s4, %s3454_s29  ;;  %p3461_p10 = scmp.lt.u32.totalorder %s3454_s29, %s4939_s4 }
  0x41   : > { %p3457_p2 = pnand %p3455_p1, %p3811_p13 }
  0x43   : > { %p3458_p6 = pneg %p3457_p2 }
  0x45   : > { %p3463_p3 = pnand %p3461_p10, %p3458_p6 }
  0x47   : > { %3466 = shalt.err (!%p3463_p3)
}
  0x48   : > { %s3467_s25 = scalar_lea.vmem %s3801_s28, 4096  ;;  %p3475_p12 = scmp.lt.s32.totalorder %s3801_s28, %s3801_s28 }
  0x49   : > { %p3468_p5 = scmp.ne.s32.totalorder %s3801_s28, %s3467_s25  ;;  %p3476_p0 = scmp.lt.s32.totalorder %s3467_s25, %s3467_s25 }
  0x4b   : > { %p3470_p7 = pnand %p3468_p5, %p3811_p13  ;;  %p3477_p1 = por %p3476_p0, %p3475_p12 }
  0x4d   : > { %p3471_p9 = pneg %p3470_p7 }
  0x4f   : > { %p3478_p2 = pnand %p3477_p1, %p3471_p9 }
  0x51   : > { %3481 = shalt.err (!%p3478_p2)
}
  0x52   : > { %s3670_s10 = smov 256   ;;  %s3671_s9 = smov 16  }
  0x53   : > { %3079 = dma.hbm_to_vmem [thread:$0]  (!%p3797_p11), %s4939_s4, 4096, %s3801_s28, [#allocation10], %s3670_s10, %s3670_s10, %s3671_s9  }
  0x54   : > { %s3672_s11 = smov [#allocation11]   ;;  %s4940_s6 = sld [smem:[#allocation24_spill]] }
  0x55   : > { %s341_s12 = sshll.u32 %s3672_s11, 4  ;;  %s342_s12 = int_to_ptr.vmem [resolvable:$true] %s341_s12 }
  0x5a   : > { %s3482_s29 = scalar_lea.hbm %s4940_s6, 2048 }
  0x5b   : > { %p3483_p6 = scmp.ne.s32.totalorder %s4940_s6, %s3482_s29  ;;  %p3489_p5 = scmp.lt.u32.totalorder %s3482_s29, %s4940_s6 }
  0x5d   : > { %p3485_p10 = pnand %p3483_p6, %p3811_p13 }
  0x5f   : > { %p3486_p3 = pneg %p3485_p10 }
  0x61   : > { %p3491_p7 = pnand %p3489_p5, %p3486_p3 }
  0x63   : > { %3494 = shalt.err (!%p3491_p7)
}
  0x64   : > { %s3495_s28 = scalar_lea.vmem %s342_s12, 2048  ;;  %p3503_p1 = scmp.lt.s32.totalorder %s342_s12, %s342_s12 }
  0x65   : > { %p3496_p9 = scmp.ne.s32.totalorder %s342_s12, %s3495_s28  ;;  %p3504_p2 = scmp.lt.s32.totalorder %s3495_s28, %s3495_s28 }
  0x67   : > { %p3498_p12 = pnand %p3496_p9, %p3811_p13  ;;  %p3505_p4 = por %p3504_p2, %p3503_p1 }
  0x69   : > { %p3499_p0 = pneg %p3498_p12 }
  0x6b   : > { %p3506_p8 = pnand %p3505_p4, %p3499_p0 }
  0x6d   : > { %3509 = shalt.err (!%p3506_p8)
}
  0x6e   : > { %s3673_s30 = smov 64   ;;  %s3674_s2 = smov 4  }
  0x6f   : > { %3082 = dma.hbm_to_vmem [thread:$0]  (!%p3797_p11), %s4940_s6, 2048, %s342_s12, [#allocation10], %s3673_s30, %s3673_s30, %s3674_s2  }
  0x70   : > { %s51_s10 = sadd.s32 1, %s3652_s15  ;;  %s42_s9 = sadd.s32 1, %s3660_s17 }
  0x71   : > { %p58_p4 = scmp.ne.s32.totalorder %s3652_s15, %s3648_s14  ;;  %p44_p8 = scmp.ge.s32.totalorder %s42_s9, 2 }
  0x72   : > { %p59_p13 = scmp.eq.s32.totalorder %s3664_s18, 0  ;;  %p4941_p6 = scmp.eq.s32.totalorder %s3767_s19, 1 }
  0x73   : > { %p3097_p3 = scmp.lt.s32.totalorder %s3664_s18, 2  ;;  %s4966_s9 = smov (%p44_p8, %s42_s9), 0 }
  0x74   : > { %p3883_p10 = por %p4941_p6, %p58_p4  ;;  %p60_p5 = por %p59_p13, %p58_p4 }
  0x75   : > { %s364_s26 = sand.u32 1, %s3652_s15   ;;  %s46_s16 = ssub.s32 %s3660_s17, %s4966_s9 }
  0x76   : > { %p49_p7 = scmp.eq.s32.totalorder %s46_s16, 0  ;;  %s2695_s11 = sshll.u32 %s364_s26, 7 }
  0x77   : > { %s2780_s12 = sshll.u32 %s3660_s17, 11  ;;  %s4943_s0 = sld [smem:[#allocation21_spill]] }
  0x78   : > { %s3895_s20 = scalar_select %p49_p7, %s3652_s15, %s51_s10  }
  0x79   : > { %s368_s28 = scalar_lea.vmem [#allocation3], %s2695_s11  ;;  %p3906_p11 = pnand %p3097_p3, %p60_p5 }
  0x7a   : > { %s377_s30 = sshll.u32 %s368_s28, 4  ;;  %s3913_s10 = scalar_lea.hbm %s4904_s1, %s2780_s12  ;;  %s3902_s30 = int_to_ptr.vmem [resolvable:$true] %s377_s30 }
  0x7b   : > { %s391_s16 = scalar_lea.vmem [#allocation6], %s2695_s11  ;;  %s3917_s29 = scalar_lea.sflag [#allocation4], %s364_s26 }
  0x7c   : > { %s3915_s27 = sshll.u32 %s391_s16, 4  ;;  %p3512_p12 = pneg %p3906_p11  ;;  %s3949_s27 = int_to_ptr.vmem [resolvable:$true] %s3915_s27 }
  0x7d   : > { %s3900_s25 = scalar_lea.hbm %s4943_s0, %s2780_s12  ;;  %s3515_s24 = scalar_lea.hbm %s4943_s0, 4096 }
  0x7e   : > { %s3510_s28 = scalar_lea.hbm %s3900_s25, 2048  ;;  %p3516_p2 = scmp.lt.u32.totalorder %s3900_s25, %s4943_s0 }
  0x7f   : > { %p3511_p9 = scmp.ne.s32.totalorder %s3900_s25, %s3510_s28  ;;  %p3517_p4 = scmp.lt.u32.totalorder %s3515_s24, %s3510_s28 }
  0x80   : > { %p3519_p13 = scmp.lt.u32.totalorder %s3510_s28, %s3900_s25 }
  0x81   : > { %p3513_p0 = pnand %p3512_p12, %p3511_p9  ;;  %p3518_p8 = por %p3517_p4, %p3516_p2 }
  0x83   : > { %p3514_p1 = pneg %p3513_p0  ;;  %p3520_p6 = por %p3519_p13, %p3518_p8 }
  0x85   : > { %p3521_p3 = pnand %p3520_p6, %p3514_p1 }
  0x87   : > { %3524 = shalt.err (!%p3521_p3)
}
  0x88   : > { %s3525_s26 = scalar_lea.vmem %s3902_s30, 2048  ;;  %s3675_s4 = smov [#allocation3]  }
  0x89   : > { %p3526_p5 = scmp.ne.s32.totalorder %s3902_s30, %s3525_s26  ;;  %s3530_s6 = sshll.u32 %s3675_s4, 4  ;;  %s3531_s6 = int_to_ptr.vmem [resolvable:$false] %s3530_s6 }
  0x8a   : > { %s3532_s11 = scalar_lea.vmem %s3531_s6, 4096  ;;  %p3533_p0 = scmp.lt.s32.totalorder %s3902_s30, %s3531_s6 }
  0x8b   : > { %p3528_p7 = pnand %p3526_p5, %p3512_p12  ;;  %p3534_p2 = scmp.lt.s32.totalorder %s3532_s11, %s3525_s26 }
  0x8d   : > { %p3529_p9 = pneg %p3528_p7  ;;  %p3535_p4 = por %p3534_p2, %p3533_p0 }
  0x8f   : > { %p3536_p8 = pnand %p3535_p4, %p3529_p9 }
  0x91   : > { %3539 = shalt.err (!%p3536_p8)
}
  0x92   : > { %s4945_s16 = smov 8   ;;  %s4946_s28 = smov 128  }
  0x93   : > { %3086 = dma.hbm_to_vmem [thread:$0]  (!%p3906_p11), %s3900_s25, 2048, %s3902_s30, %s3917_s29, %s4946_s28, %s4946_s28, %s4945_s16  }
  0x94   : > { %s387_s24 = sand.u32 1, %s3664_s18   ;;  %s3540_s12 = scalar_lea.hbm %s3913_s10, 2048 }
  0x95   : > { %s3952_s22 = scalar_lea.sflag [#allocation7], %s387_s24  ;;  %p3541_p1 = scmp.ne.s32.totalorder %s3913_s10, %s3540_s12 }
  0x96   : > { %s3545_s6 = scalar_lea.hbm %s4904_s1, 4096  ;;  %p3546_p3 = scmp.lt.u32.totalorder %s3913_s10, %s4904_s1 }
  0x97   : > { %p3543_p13 = pnand %p3541_p1, %p3512_p12  ;;  %p3547_p5 = scmp.lt.u32.totalorder %s3545_s6, %s3540_s12 }
  0x98   : > { %p3549_p9 = scmp.lt.u32.totalorder %s3540_s12, %s3913_s10 }
  0x99   : > { %p3544_p6 = pneg %p3543_p13  ;;  %p3548_p7 = por %p3547_p5, %p3546_p3 }
  0x9b   : > { %p3550_p0 = por %p3549_p9, %p3548_p7 }
  0x9d   : > { %p3551_p2 = pnand %p3550_p0, %p3544_p6 }
  0x9f   : > { %3554 = shalt.err (!%p3551_p2)
}
  0xa0   : > { %s3555_s25 = scalar_lea.vmem %s3949_s27, 2048  ;;  %s3676_s30 = smov [#allocation6]  }
  0xa1   : > { %p3556_p4 = scmp.ne.s32.totalorder %s3949_s27, %s3555_s25  ;;  %s3560_s29 = sshll.u32 %s3676_s30, 4  ;;  %s3561_s29 = int_to_ptr.vmem [resolvable:$false] %s3560_s29 }
  0xa2   : > { %s3562_s0 = scalar_lea.vmem %s3561_s29, 4096  ;;  %p3563_p13 = scmp.lt.s32.totalorder %s3949_s27, %s3561_s29 }
  0xa3   : > { %p3558_p8 = pnand %p3556_p4, %p3512_p12  ;;  %p3564_p3 = scmp.lt.s32.totalorder %s3562_s0, %s3555_s25 }
  0xa5   : > { %p3559_p1 = pneg %p3558_p8  ;;  %p3565_p5 = por %p3564_p3, %p3563_p13 }
  0xa7   : > { %p3566_p7 = pnand %p3565_p5, %p3559_p1 }
  0xa9   : > { %3569 = shalt.err (!%p3566_p7)
}
  0xaa   : > { %3089 = dma.hbm_to_vmem [thread:$0]  (!%p3906_p11), %s3913_s10, 2048, %s3949_s27, %s3952_s22, %s4946_s28, %s4946_s28, %s4945_s16  }
  0xab   : > { %p4947_p12 = scmp.ne.s32.totalorder %s4935_s23, 0 }
  0xac   : > { %s3984_s24 = sand.u32 (!%p4947_p12), 1, %s3648_s14   ;;  %p4948_p6 = scmp.ne.s32.totalorder (!%p4947_p12), %s4932_s21, 0 }
  0xad   : > { %410 = sbr.rel (%p4947_p12) target bundleno = 1895 (0x767), region = 60  ;;  %s3987_s12 = sshll.u32 (!%p4947_p12), %s3984_s24, 7 }
  0xae   : > { %s413_s2 = scalar_lea.sflag (!%p4947_p12), [#allocation4], %s3984_s24  ;;  %s3991_s26 = scalar_lea.vmem (!%p4947_p12), [#allocation3], %s3987_s12 }
  0xb4   : > { %3623 = dma.done.wait (%p4948_p6), %s413_s2, 2048  }
  0xb5   : > { %3625 = vsyncadd (%p4948_p6), %s413_s2, 4294965248  ;;  %s421_s23 = sand.u32 1, %s3767_s19   ;;  %s3999_s27 = scalar_lea.vmem [#allocation6], %s3987_s12 }
  0xb6   : > { %s422_s10 = scalar_lea.sflag [#allocation7], %s421_s23 }
  0xb7   : > { %3627 = dma.done.wait (%p4948_p6), %s422_s10, 2048  }
  0xb8   : > { %3629 = vsyncadd (%p4948_p6), %s422_s10, 4294965248  ;;  %p4949_p11 = scmp.eq.s32.totalorder %s3767_s19, 0 }
  0xba   : > { %3631 = dma.done.wait (%p4949_p11), [#allocation7], 2048   ;;  %p4950_p9 = pmov %p4949_p11 }
  0xbc   : > { %3633 = vsyncadd (%p4950_p9), [#allocation7], 4294965248  ;;  %p4951_p0 = pmov %p4950_p9 }
  0xbe   : > { %3635 = dma.done.wait (%p4951_p0), [#allocation10], 6144   ;;  %p4952_p2 = pmov %p4951_p0 }
  0xbf   : > { %v3677_v0 = vmov 0   ;;  %v3162_v1 = vld [vmem:[#allocation9 + $0x4] ss:$16 sps:$4 sm:$0xff]   ;;  %v3164_v2 = vld [vmem:[#allocation9] ss:$16 sps:$4 sm:$0xff]   ;;  %v487_v18 = vld [vmem:[%s3999_s27 + $0x8] sm:$0xff] }
  0xc0   : > { %3637 = vsyncadd (%p4952_p2), [#allocation10], 4294961152  ;;  %756 = vmatprep.mubr.bf16.mxu0 %v3677_v0  ;;  %796 = vmatprep.mubr.bf16.mxu1 %v3677_v0  ;;  %v3165_v3 = vld [vmem:[#allocation9 + $0x24] ss:$16 sps:$4 sm:$0xff]   ;;  %v3167_v4 = vld [vmem:[#allocation9 + $0x20] ss:$16 sps:$4 sm:$0xff]  }
  0xc1   : > { %724 = vmatprep.subr.bf16.mxu0 %v3162_v1  ;;  %3039 = vmatprep.subr.bf16.mxu1 %v3162_v1  ;;  %v3168_v5 = vld [vmem:[#allocation9 + $0x44] ss:$16 sps:$4 sm:$0xff]   ;;  %v3170_v6 = vld [vmem:[#allocation9 + $0x40] ss:$16 sps:$4 sm:$0xff]   ;;  %v495_v20 = vld [vmem:[%s3999_s27 + $0x48] sm:$0xff]  ;;  %s4953_s29 = sld [smem:[#allocation25_spill]] }
  0xc2   : > { %725 = vmatpush1.bf16.msra.mxu0 %v3164_v2  ;;  %3047 = vmatpush1.bf16.msra.mxu1 %v3164_v2  ;;  %v3171_v7 = vld [vmem:[#allocation9 + $0x64] ss:$16 sps:$4 sm:$0xff]   ;;  %v3173_v8 = vld [vmem:[#allocation9 + $0x60] ss:$16 sps:$4 sm:$0xff]   ;;  %v489_v28 = vld [vmem:[%s3999_s27 + $0x18] sm:$0xff]  ;;  %s4786_s0 = scalar_lea.vmem [#allocation12], %s3987_s12 }
  0xc3   : > { %726 = vmatprep.subr.bf16.mxu0 %v3165_v3  ;;  %3040 = vmatprep.subr.bf16.mxu1 %v3165_v3  ;;  %v3174_v9 = vld [vmem:[#allocation9 + $0x84] ss:$16 sps:$4 sm:$0xff]   ;;  %v3176_v10 = vld [vmem:[#allocation9 + $0x80] ss:$16 sps:$4 sm:$0xff]   ;;  %v3212_v29 = vld [vmem:[#allocation9 + $0xc] ss:$16 sps:$4 sm:$0xff]  }
  0xc4   : > { %v3177_v11 = vld [vmem:[#allocation9 + $0xa4] ss:$16 sps:$4 sm:$0xff]   ;;  %v3179_v12 = vld [vmem:[#allocation9 + $0xa0] ss:$16 sps:$4 sm:$0xff]   ;;  %v3210_v31 = vld [vmem:[#allocation9 + $0x8] ss:$16 sps:$4 sm:$0xff]  }
  0xc5   : > { %v3180_v13 = vld [vmem:[#allocation9 + $0xc4] ss:$16 sps:$4 sm:$0xff]   ;;  %v3182_v14 = vld [vmem:[#allocation9 + $0xc0] ss:$16 sps:$4 sm:$0xff]   ;;  %v497_v32 = vld [vmem:[%s3999_s27 + $0x58] sm:$0xff]  ;;  %s4954_s12 = sld [smem:[#allocation19_spill]] }
  0xc6   : > { %727 = vmatpush1.bf16.msra.mxu0 %v3167_v4  ;;  %3048 = vmatpush1.bf16.msra.mxu1 %v3167_v4  ;;  %v3183_v15 = vld [vmem:[#allocation9 + $0xe4] ss:$16 sps:$4 sm:$0xff]   ;;  %v3185_v16 = vld [vmem:[#allocation9 + $0xe0] ss:$16 sps:$4 sm:$0xff]   ;;  %v3215_v33 = vld [vmem:[#allocation9 + $0x2c] ss:$16 sps:$4 sm:$0xff]  }
  0xc7   : > { %728 = vmatprep.subr.bf16.mxu0 %v3168_v5  ;;  %3041 = vmatprep.subr.bf16.mxu1 %v3168_v5  ;;  %v486_v17 = vld [vmem:[%s3999_s27] sm:$0xff]  ;;  %v3191_v25 = vld [vmem:[#allocation8 + $0x14] ss:$8 sps:$4 sm:$0xff]   ;;  %v3189_v26 = vld [vmem:[#allocation8 + $0x10] ss:$8 sps:$4 sm:$0xff]   ;;  %s2535_s21 = scalar_lea.sflag [#allocation5], %s3984_s24 }
  0xc8   : > { %v494_v19 = vld [vmem:[%s3999_s27 + $0x40] sm:$0xff]  ;;  %v4019_v22 = vpack.c.bf16 %v487_v18, %v486_v17  ;;  %v488_v27 = vld [vmem:[%s3999_s27 + $0x10] sm:$0xff]  ;;  %v491_v41 = vld [vmem:[%s3999_s27 + $0x28] sm:$0xff]  ;;  %s3678_s28 = smov [#allocation12]  }
  0xc9   : > { %v3188_v21 = vld [vmem:[#allocation8 + $0x4] ss:$8 sps:$4 sm:$0xff]   ;;  %v4021_v23 = vpack.c.bf16 %v495_v20, %v494_v19  ;;  %v3186_v24 = vld [vmem:[#allocation8] ss:$8 sps:$4 sm:$0xff]   ;;  %v496_v30 = vld [vmem:[%s3999_s27 + $0x50] sm:$0xff]  ;;  %v4031_v35 = vpack.c.bf16 %v489_v28, %v488_v27  ;;  %s3574_s22 = sshll.u32 %s3678_s28, 4  ;;  %s3575_s22 = int_to_ptr.vmem [resolvable:$false] %s3574_s22 }
  0xca   : > { %729 = vmatpush1.bf16.msra.mxu0 %v3170_v6  ;;  %3049 = vmatpush1.bf16.msra.mxu1 %v3170_v6  ;;  %v3194_v34 = vld [vmem:[#allocation8 + $0x24] ss:$8 sps:$4 sm:$0xff]   ;;  %v4033_v36 = vpack.c.bf16 %v497_v32, %v496_v30  ;;  %v3192_v37 = vld [vmem:[#allocation8 + $0x20] ss:$8 sps:$4 sm:$0xff]   ;;  %v3197_v38 = vld [vmem:[#allocation8 + $0x34] ss:$8 sps:$4 sm:$0xff]  }
  0xcb   : > { %730 = vmatprep.subr.bf16.mxu0 %v3171_v7  ;;  %3042 = vmatprep.subr.bf16.mxu1 %v3171_v7  ;;  %v3195_v39 = vld [vmem:[#allocation8 + $0x30] ss:$8 sps:$4 sm:$0xff]   ;;  %v490_v40 = vld [vmem:[%s3999_s27 + $0x20] sm:$0xff]  ;;  %v499_v45 = vld [vmem:[%s3999_s27 + $0x68] sm:$0xff]  ;;  %s2782_s2 = sshll.u32 %s4954_s12, 11  ;;  %s3576_s4 = scalar_lea.vmem %s3575_s22, 4096 }
  0xcc   : > { %v3213_v42 = vld [vmem:[#allocation9 + $0x28] ss:$16 sps:$4 sm:$0xff]   ;;  %v3200_v43 = vld [vmem:[#allocation8 + $0x44] ss:$8 sps:$4 sm:$0xff]   ;;  %v4043_v49 = vpack.c.bf16 %v491_v41, %v490_v40  ;;  %v3203_v50 = vld [vmem:[#allocation8 + $0x54] ss:$8 sps:$4 sm:$0xff]  }
  0xcd   : > { %v498_v44 = vld [vmem:[%s3999_s27 + $0x60] sm:$0xff]  ;;  %v3218_v46 = vld [vmem:[#allocation9 + $0x4c] ss:$16 sps:$4 sm:$0xff]   ;;  %v3216_v47 = vld [vmem:[#allocation9 + $0x48] ss:$16 sps:$4 sm:$0xff]  }
  0xce   : > { %731 = vmatpush1.bf16.msra.mxu0 %v3173_v8  ;;  %3050 = vmatpush1.bf16.msra.mxu1 %v3173_v8  ;;  %v3198_v48 = vld [vmem:[#allocation8 + $0x40] ss:$8 sps:$4 sm:$0xff]   ;;  %v4045_v51 = vpack.c.bf16 %v499_v45, %v498_v44  ;;  %v3221_v52 = vld [vmem:[#allocation9 + $0x6c] ss:$16 sps:$4 sm:$0xff]   ;;  %v3201_v54 = vld [vmem:[#allocation8 + $0x50] ss:$8 sps:$4 sm:$0xff]  }
  0xcf   : > { %732 = vmatprep.subr.bf16.mxu0 %v3174_v9  ;;  %3043 = vmatprep.subr.bf16.mxu1 %v3174_v9  ;;  %v3219_v53 = vld [vmem:[#allocation9 + $0x68] ss:$16 sps:$4 sm:$0xff]   ;;  %v492_v55 = vld [vmem:[%s3999_s27 + $0x30] sm:$0xff]  ;;  %v3224_v59 = vld [vmem:[#allocation9 + $0x8c] ss:$16 sps:$4 sm:$0xff]  }
  0xd0   : > { %v493_v56 = vld [vmem:[%s3999_s27 + $0x38] sm:$0xff]  ;;  %v500_v57 = vld [vmem:[%s3999_s27 + $0x70] sm:$0xff]  ;;  %v3206_v60 = vld [vmem:[#allocation8 + $0x64] ss:$8 sps:$4 sm:$0xff]  }
  0xd1   : > { %v501_v58 = vld [vmem:[%s3999_s27 + $0x78] sm:$0xff]  ;;  %v505_v61 = vpack.c.bf16 %v493_v56, %v492_v55  ;;  %v3204_v63 = vld [vmem:[#allocation8 + $0x60] ss:$8 sps:$4 sm:$0xff]   ;;  %v1020_v19 = vld [vmem:[%s3991_s26 + $0x30] sm:$0xff]  ;;  %s4955_s27 = sld [smem:[#allocation26_spill]] }
  0xd2   : > { %733 = vmatpush1.bf16.msra.mxu0 %v3176_v10  ;;  %3051 = vmatpush1.bf16.msra.mxu1 %v3176_v10  ;;  %v4055_v62 = vpack.c.bf16 %v501_v58, %v500_v57  ;;  %v3209_v1 = vld [vmem:[#allocation8 + $0x74] ss:$8 sps:$4 sm:$0xff]   ;;  %v3222_v2 = vld [vmem:[#allocation9 + $0x88] ss:$16 sps:$4 sm:$0xff]   ;;  %v1014_v5 = vld [vmem:[%s3991_s26] sm:$0xff] }
  0xd3   : > { %734 = vmatprep.subr.bf16.mxu0 %v3177_v11  ;;  %3044 = vmatprep.subr.bf16.mxu1 %v3177_v11  ;;  %v3227_v3 = vld [vmem:[#allocation9 + $0xac] ss:$16 sps:$4 sm:$0xff]   ;;  %v3207_v4 = vld [vmem:[#allocation8 + $0x70] ss:$8 sps:$4 sm:$0xff]  }
  0xd4   : > { %v1015_v6 = vld [vmem:[%s3991_s26 + $0x8] sm:$0xff]  ;;  %v1021_v20 = vld [vmem:[%s3991_s26 + $0x38] sm:$0xff]  ;;  %v1028_v32 = vld [vmem:[%s3991_s26 + $0x70] sm:$0xff] }
  0xd5   : > { %v3225_v7 = vld [vmem:[#allocation9 + $0xa8] ss:$16 sps:$4 sm:$0xff]   ;;  %v3230_v8 = vld [vmem:[#allocation9 + $0xcc] ss:$16 sps:$4 sm:$0xff]   ;;  %v1030_v9 = vpack.c.bf16 %v1015_v6, %v1014_v5 }
  0xd6   : > { %735 = vmatpush1.bf16.msra.mxu0 %v3179_v12  ;;  %3052 = vmatpush1.bf16.msra.mxu1 %v3179_v12  ;;  %v3228_v10 = vld [vmem:[#allocation9 + $0xc8] ss:$16 sps:$4 sm:$0xff]   ;;  %v3233_v11 = vld [vmem:[#allocation9 + $0xec] ss:$16 sps:$4 sm:$0xff]   ;;  %v1016_v12 = vld [vmem:[%s3991_s26 + $0x10] sm:$0xff] }
  0xd7   : > { %736 = vmatprep.subr.bf16.mxu0 %v3180_v13  ;;  %3045 = vmatprep.subr.bf16.mxu1 %v3180_v13  ;;  %v1017_v13 = vld [vmem:[%s3991_s26 + $0x18] sm:$0xff]  ;;  %v1019_v17 = vld [vmem:[%s3991_s26 + $0x28] sm:$0xff]  ;;  %s4849_s19 = scalar_lea.hbm %s4955_s27, %s2782_s2 }
  0xd8   : > { %v1025_v27 = vld [vmem:[%s3991_s26 + $0x58] sm:$0xff]  ;;  %v1027_v30 = vld [vmem:[%s3991_s26 + $0x68] sm:$0xff] }
  0xda   : > { %737 = vmatpush1.bf16.msra.mxu0 %v3182_v14  ;;  %3053 = vmatpush1.bf16.msra.mxu1 %v3182_v14  ;;  %v3231_v14 = vld [vmem:[#allocation9 + $0xe8] ss:$16 sps:$4 sm:$0xff]  }
  0xdb   : > { %738 = vmatprep.subr.bf16.mxu0 %v3183_v15  ;;  %3046 = vmatprep.subr.bf16.mxu1 %v3183_v15  ;;  %v1031_v15 = vpack.c.bf16 %v1017_v13, %v1016_v12 }
  0xde   : > { %739 = vmatpush1.bf16.msra.mxu0 %v3185_v16  ;;  %3054 = vmatpush1.bf16.msra.mxu1 %v3185_v16  ;;  %v1018_v16 = vld [vmem:[%s3991_s26 + $0x20] sm:$0xff] }
  0xdf   : > { %1146 = vmatprep.subr.bf16.mxu0 %v3188_v21  ;;  %837 = vmatprep.subr.bf16.mxu1 %v3212_v29  ;;  %v1032_v18 = vpack.c.bf16 %v1019_v17, %v1018_v16  ;;  %v1033_v21 = vpack.c.bf16 %v1021_v20, %v1020_v19  ;;  %v1026_v29 = vld [vmem:[%s3991_s26 + $0x60] sm:$0xff] }
  0xe1   : > { %757 = vmatmul.mubr.bf16.vlgmr.msra.gmra.mrb[0].mxu0 %v4019_v22  ;;  %797 = vmatmul.mubr.bf16.vlgmr.msra.gmra.mrb[0].mxu1 %v4021_v23 }
  0xe2   : > { %1147 = vmatpush1.bf16.msra.mxu0 %v3186_v24  ;;  %766 = vmatprep.mubr.bf16.mxu0 %v3677_v0  ;;  %v1023_v24 = vld [vmem:[%s3991_s26 + $0x48] sm:$0xff] }
  0xe3   : > { %1148 = vmatprep.subr.bf16.mxu0 %v3191_v25  ;;  %806 = vmatprep.mubr.bf16.mxu1 %v3677_v0 }
  0xe4   : > { %838 = vmatpush1.bf16.msra.mxu1 %v3210_v31  ;;  %v1036_v31 = vpack.c.bf16 %v1027_v30, %v1026_v29 }
  0xe5   : > { %839 = vmatprep.subr.bf16.mxu1 %v3215_v33  ;;  %v1029_v33 = vld [vmem:[%s3991_s26 + $0x78] sm:$0xff] }
  0xe6   : > { %1149 = vmatpush1.bf16.msra.mxu0 %v3189_v26  ;;  %v1024_v26 = vld [vmem:[%s3991_s26 + $0x50] sm:$0xff] }
  0xe7   : > { %1150 = vmatprep.subr.bf16.mxu0 %v3194_v34  ;;  %v1035_v28 = vpack.c.bf16 %v1025_v27, %v1024_v26  ;;  %v1037_v34 = vpack.c.bf16 %v1029_v33, %v1028_v32 }
  0xe8   : > { %840 = vmatpush1.bf16.msra.mxu1 %v3213_v42 }
  0xe9   : > { %767 = vmatmul.mubr.bf16.gmra.mrb[4].mxu0 %v4031_v35  ;;  %807 = vmatmul.mubr.bf16.gmra.mrb[4].mxu1 %v4033_v36 }
  0xea   : > { %1151 = vmatpush1.bf16.msra.mxu0 %v3192_v37  ;;  %776 = vmatprep.mubr.bf16.mxu0 %v3677_v0 }
  0xeb   : > { %1152 = vmatprep.subr.bf16.mxu0 %v3197_v38  ;;  %816 = vmatprep.mubr.bf16.mxu1 %v3677_v0  ;;  %v4103_v38 = vld [vmem:[%s4908_s5] sm:$0xf] }
  0xec   : > { %841 = vmatprep.subr.bf16.mxu1 %v3218_v46 }
  0xed   : > { %842 = vmatpush1.bf16.msra.mxu1 %v3216_v47 }
  0xee   : > { %1153 = vmatpush1.bf16.msra.mxu0 %v3195_v39  ;;  %843 = vmatprep.subr.bf16.mxu1 %v3221_v52 }
  0xef   : > { %1154 = vmatprep.subr.bf16.mxu0 %v3200_v43 }
  0xf1   : > { %777 = vmatmul.mubr.bf16.gmra.mrb[8].mxu0 %v4043_v49  ;;  %817 = vmatmul.mubr.bf16.gmra.mrb[8].mxu1 %v4045_v51 }
  0xf2   : > { %1155 = vmatpush1.bf16.msra.mxu0 %v3198_v48  ;;  %786 = vmatprep.mubr.bf16.mxu0 %v3677_v0 }
  0xf3   : > { %1156 = vmatprep.subr.bf16.mxu0 %v3203_v50  ;;  %826 = vmatprep.mubr.bf16.mxu1 %v3677_v0 }
  0xf4   : > { %844 = vmatpush1.bf16.msra.mxu1 %v3219_v53 }
  0xf5   : > { %845 = vmatprep.subr.bf16.mxu1 %v3224_v59 }
  0xf6   : > { %1157 = vmatpush1.bf16.msra.mxu0 %v3201_v54 }
  0xf7   : > { %1158 = vmatprep.subr.bf16.mxu0 %v3206_v60 }
  0xf8   : > { %846 = vmatpush1.bf16.msra.mxu1 %v3222_v2 }
  0xf9   : > { %787 = vmatmul.mubr.bf16.gmra.mrb[12].mxu0 %v505_v61  ;;  %827 = vmatmul.mubr.bf16.gmra.mrb[12].mxu1 %v4055_v62 }
  0xfa   : > { %1159 = vmatpush1.bf16.msra.mxu0 %v3204_v63  ;;  %1178 = vmatprep.mubr.bf16.mxu0 %v3677_v0 }
  0xfb   : > { %1160 = vmatprep.subr.bf16.mxu0 %v3209_v1  ;;  %847 = vmatprep.subr.bf16.mxu1 %v3227_v3 }
  0xfc   : > { %869 = vmatprep.mubr.bf16.mxu1 %v3677_v0  ;;  %848 = vmatpush1.bf16.msra.mxu1 %v3225_v7 }
  0xfd   : > { %849 = vmatprep.subr.bf16.mxu1 %v3230_v8 }
  0xfe   : > { %1161 = vmatpush1.bf16.msra.mxu0 %v3207_v4 }
 0x100   : > { %850 = vmatpush1.bf16.msra.mxu1 %v3228_v10 }
 0x101   : > { %1179 = vmatmul.mubr.bf16.vlgmr.msra.gmra.mrb[16].mxu0 %v1030_v9  ;;  %851 = vmatprep.subr.bf16.mxu1 %v3233_v11 }
 0x102   : > { %1188 = vmatprep.mubr.bf16.mxu0 %v3677_v0 }
 0x104   : > { %852 = vmatpush1.bf16.msra.mxu1 %v3231_v14 }
 0x107   : > { %870 = vmatmul.mubr.bf16.vlgmr.msra.gmra.mrb[16].mxu1 %v4019_v22  ;;  %v1022_v22 = vld [vmem:[%s3991_s26 + $0x40] sm:$0xff] }
 0x108   : > { %879 = vmatprep.mubr.bf16.mxu1 %v3677_v0  ;;  %v1034_v25 = vpack.c.bf16 %v1023_v24, %v1022_v22 }
 0x109   : > { %1189 = vmatmul.mubr.bf16.gmra.mrb[20].mxu0 %v1031_v15 }
 0x10a   : > { %1198 = vmatprep.mubr.bf16.mxu0 %v3677_v0 }
 0x10f   : > { %880 = vmatmul.mubr.bf16.gmra.mrb[20].mxu1 %v4031_v35 }
 0x110   : > { %889 = vmatprep.mubr.bf16.mxu1 %v3677_v0 }
 0x111   : > { %1199 = vmatmul.mubr.bf16.gmra.mrb[24].mxu0 %v1032_v18 }
 0x112   : > { %1208 = vmatprep.mubr.bf16.mxu0 %v3677_v0 }
 0x117   : > { %890 = vmatmul.mubr.bf16.gmra.mrb[24].mxu1 %v4043_v49 }
 0x118   : > { %899 = vmatprep.mubr.bf16.mxu1 %v3677_v0 }
 0x119   : > { %1209 = vmatmul.mubr.bf16.gmra.mrb[28].mxu0 %v1033_v21 }
 0x11a   : > { %1218 = vmatprep.mubr.bf16.mxu0 %v3677_v0 }
 0x11f   : > { %900 = vmatmul.mubr.bf16.gmra.mrb[28].mxu1 %v505_v61 }
 0x120   : > { %909 = vmatprep.mubr.bf16.mxu1 %v3677_v0 }
 0x121   : > { %1219 = vmatmul.mubr.bf16.gmra.mrb[32].mxu0 %v1034_v25 }
 0x122   : > { %1228 = vmatprep.mubr.bf16.mxu0 %v3677_v0 }
 0x127   : > { %910 = vmatmul.mubr.bf16.gmra.mrb[32].mxu1 %v4021_v23  ;;  %v544_v23 = vlaneseq }
 0x128   : > { %919 = vmatprep.mubr.bf16.mxu1 %v3677_v0 }
 0x129   : > { %1229 = vmatmul.mubr.bf16.gmra.mrb[36].mxu0 %v1035_v28  ;;  %v4097_v35 = vshrl.u32 %v544_v23, 7 }
 0x12a   : > { %1238 = vmatprep.mubr.bf16.mxu0 %v3677_v0 }
 0x12b   : > { %v546_v37 = vsub.s32 0, %v4097_v35 }
 0x12d   : > { %v4109_v39 = vrot.slane %v4103_v38, %v546_v37 }
 0x12f   : > { %920 = vmatmul.mubr.bf16.gmra.mrb[36].mxu1 %v4033_v36  ;;  %v550_v36 = vsub.s32 1, %v4097_v35 }
 0x130   : > { %929 = vmatprep.mubr.bf16.mxu1 %v3677_v0 }
 0x131   : > { %1239 = vmatmul.mubr.bf16.gmra.mrb[40].mxu0 %v1036_v31  ;;  %v4114_v40 = vrot.slane %v4103_v38, %v550_v36 }
 0x132   : > { %1248 = vmatprep.mubr.bf16.mxu0 %v3677_v0 }
 0x137   : > { %930 = vmatmul.mubr.bf16.gmra.mrb[40].mxu1 %v4045_v51 }
 0x138   : > { %939 = vmatprep.mubr.bf16.mxu1 %v3677_v0 }
 0x139   : > { %1249 = vmatmul.mubr.bf16.gmra.mrb[44].mxu0 %v1037_v34 }
 0x13f   : > { %940 = vmatmul.mubr.bf16.gmra.mrb[44].mxu1 %v4055_v62 }
 0x1b4   : > { %v758_v0 = vpop.f32.mrb[0].mxu0  ;;  %v798_v41 = vpop.f32.mrb[0].mxu1 }
 0x1b5   : > { %v760_v42 = vpop.f32.mrb[1].mxu0  ;;  %v799_v43 = vadd.f32 %v798_v41, %v4109_v39  ;;  %v800_v44 = vpop.f32.mrb[1].mxu1  ;;  %v759_v48 = vadd.f32 %v758_v0, %v4109_v39 }
 0x1b6   : > { %v762_v45 = vpop.f32.mrb[2].mxu0  ;;  %v801_v46 = vadd.f32 %v800_v44, %v4114_v40  ;;  %v802_v47 = vpop.f32.mrb[2].mxu1  ;;  %v761_v53 = vadd.f32 %v760_v42, %v4114_v40 }
 0x1b7   : > { %v763_v49 = vadd.f32 %v762_v45, %v4109_v39  ;;  %v764_v50 = vpop.f32.mrb[3].mxu0  ;;  %v803_v51 = vadd.f32 %v802_v47, %v4109_v39  ;;  %v804_v52 = vpop.f32.mrb[3].mxu1 }
 0x1b8   : > { %v765_v54 = vadd.f32 %v764_v50, %v4114_v40  ;;  %v805_v55 = vadd.f32 %v804_v52, %v4114_v40 }
 0x1b9   : > { %v950_v56 = vpack.c.bf16 %v763_v49, %v759_v48  ;;  %v4124_v57 = vpack.c.bf16 %v803_v51, %v799_v43  ;;  %v1054_v48 = vld [vmem:[%s4906_s3] sm:$0x3] }
 0x1ba   : > { %v951_v58 = vpack.c.bf16 %v765_v54, %v761_v53  ;;  %v4126_v59 = vpack.c.bf16 %v805_v55, %v801_v46 }
 0x1bb   : > { %2911 = vmatprep.subr.bf16.mxu1 %v950_v56 }
 0x1bc   : > { %v768_v60 = vpop.f32.mrb[4].mxu0  ;;  %2912 = vmatpush3.bf16.xpose.msra.mxu1 %v950_v56  ;;  %2975 = vmatprep.subr.bf16.mxu0 %v951_v58  ;;  %v808_v61 = vpop.f32.mrb[4].mxu1 }
 0x1bd   : > { %v770_v62 = vpop.f32.mrb[5].mxu0  ;;  %2976 = vmatpush3.bf16.xpose.msra.mxu0 %v951_v58  ;;  %v809_v63 = vadd.f32 %v808_v61, %v4109_v39  ;;  %v810_v1 = vpop.f32.mrb[5].mxu1  ;;  %v769_v5 = vadd.f32 %v768_v60, %v4109_v39 }
 0x1be   : > { %v772_v2 = vpop.f32.mrb[6].mxu0  ;;  %v811_v3 = vadd.f32 %v810_v1, %v4114_v40  ;;  %v812_v4 = vpop.f32.mrb[6].mxu1  ;;  %v771_v10 = vadd.f32 %v770_v62, %v4114_v40  ;;  %v4165_v62 = vrot.slane %v1054_v48, %v546_v37 }
 0x1bf   : > { %v773_v6 = vadd.f32 %v772_v2, %v4109_v39  ;;  %v774_v7 = vpop.f32.mrb[7].mxu0  ;;  %v813_v8 = vadd.f32 %v812_v4, %v4109_v39  ;;  %v814_v9 = vpop.f32.mrb[7].mxu1  ;;  %v4171_v2 = vrot.slane %v1054_v48, %v550_v36  ;;  %v554_v36 = vsub.s32 2, %v4097_v35 }
 0x1c0   : > { %v775_v11 = vadd.f32 %v774_v7, %v4114_v40  ;;  %v815_v12 = vadd.f32 %v814_v9, %v4114_v40 }
 0x1c1   : > { %v954_v13 = vpack.c.bf16 %v773_v6, %v769_v5  ;;  %v4136_v14 = vpack.c.bf16 %v813_v8, %v809_v63  ;;  %v558_v8 = vsub.s32 3, %v4097_v35 }
 0x1c2   : > { %v955_v15 = vpack.c.bf16 %v775_v11, %v771_v10  ;;  %v4138_v16 = vpack.c.bf16 %v815_v12, %v811_v3 }
 0x1c3   : > { %2913 = vmatprep.subr.bf16.mxu1 %v954_v13 }
 0x1c4   : > { %v778_v17 = vpop.f32.mrb[8].mxu0  ;;  %2914 = vmatpush3.bf16.xpose.msra.mxu1 %v954_v13  ;;  %2977 = vmatprep.subr.bf16.mxu0 %v955_v15  ;;  %v818_v18 = vpop.f32.mrb[8].mxu1 }
 0x1c5   : > { %v780_v19 = vpop.f32.mrb[9].mxu0  ;;  %2978 = vmatpush3.bf16.xpose.msra.mxu0 %v955_v15  ;;  %v819_v20 = vadd.f32 %v818_v18, %v4109_v39  ;;  %v820_v21 = vpop.f32.mrb[9].mxu1  ;;  %v779_v26 = vadd.f32 %v778_v17, %v4109_v39  ;;  %v4184_v15 = vrot.slane %v4103_v38, %v554_v36  ;;  %v4187_v18 = vrot.slane %v4103_v38, %v558_v8 }
 0x1c6   : > { %v782_v22 = vpop.f32.mrb[10].mxu0  ;;  %v821_v24 = vadd.f32 %v820_v21, %v4114_v40  ;;  %v822_v25 = vpop.f32.mrb[10].mxu1  ;;  %v781_v31 = vadd.f32 %v780_v19, %v4114_v40 }
 0x1c7   : > { %v783_v27 = vadd.f32 %v782_v22, %v4109_v39  ;;  %v784_v28 = vpop.f32.mrb[11].mxu0  ;;  %v823_v29 = vadd.f32 %v822_v25, %v4109_v39  ;;  %v824_v30 = vpop.f32.mrb[11].mxu1 }
 0x1c8   : > { %v785_v32 = vadd.f32 %v784_v28, %v4114_v40  ;;  %v825_v33 = vadd.f32 %v824_v30, %v4114_v40 }
 0x1c9   : > { %v958_v34 = vpack.c.bf16 %v783_v27, %v779_v26  ;;  %v4148_v23 = vpack.c.bf16 %v823_v29, %v819_v20 }
 0x1ca   : > { %v959_v0 = vpack.c.bf16 %v785_v32, %v781_v31  ;;  %v4150_v41 = vpack.c.bf16 %v825_v33, %v821_v24 }
 0x1cb   : > { %2915 = vmatprep.subr.bf16.mxu1 %v958_v34 }
 0x1cc   : > { %v788_v42 = vpop.f32.mrb[12].mxu0  ;;  %2916 = vmatpush3.bf16.xpose.msra.mxu1 %v958_v34  ;;  %2979 = vmatprep.subr.bf16.mxu0 %v959_v0  ;;  %v828_v43 = vpop.f32.mrb[12].mxu1 }
 0x1cd   : > { %v790_v44 = vpop.f32.mrb[13].mxu0  ;;  %2980 = vmatpush3.bf16.xpose.msra.mxu0 %v959_v0  ;;  %v829_v45 = vadd.f32 %v828_v43, %v4109_v39  ;;  %v830_v46 = vpop.f32.mrb[13].mxu1  ;;  %v789_v51 = vadd.f32 %v788_v42, %v4109_v39 }
 0x1ce   : > { %v792_v47 = vpop.f32.mrb[14].mxu0  ;;  %v831_v49 = vadd.f32 %v830_v46, %v4114_v40  ;;  %v832_v50 = vpop.f32.mrb[14].mxu1  ;;  %v791_v56 = vadd.f32 %v790_v44, %v4114_v40 }
 0x1cf   : > { %v793_v52 = vadd.f32 %v792_v47, %v4109_v39  ;;  %v794_v53 = vpop.f32.mrb[15].mxu0  ;;  %v833_v54 = vadd.f32 %v832_v50, %v4109_v39  ;;  %v834_v55 = vpop.f32.mrb[15].mxu1 }
 0x1d0   : > { %v795_v58 = vadd.f32 %v794_v53, %v4114_v40  ;;  %v835_v60 = vadd.f32 %v834_v55, %v4114_v40 }
 0x1d1   : > { %v962_v61 = vpack.c.bf16 %v793_v52, %v789_v51  ;;  %v4167_v63 = vpack.c.bf16 %v833_v54, %v829_v45 }
 0x1d2   : > { %v963_v1 = vpack.c.bf16 %v795_v58, %v791_v56  ;;  %v4173_v39 = vpack.c.bf16 %v835_v60, %v831_v49 }
 0x1d3   : > { %2917 = vmatprep.subr.bf16.mxu1 %v962_v61 }
 0x1d4   : > { %v1180_v3 = vpop.f32.mrb[16].mxu0  ;;  %2918 = vmatpush3.bf16.xpose.msra.mxu1 %v962_v61  ;;  %2981 = vmatprep.subr.bf16.mxu0 %v963_v1 }
 0x1d5   : > { %v1181_v40 = vadd.f32 %v1180_v3, %v4165_v62  ;;  %v1182_v4 = vpop.f32.mrb[17].mxu0  ;;  %2982 = vmatpush3.bf16.xpose.msra.mxu0 %v963_v1  ;;  %2919 = vmatprep.subr.bf16.mxu1 %v4124_v57 }
 0x1d6   : > { %v1183_v37 = vadd.f32 %v1182_v4, %v4171_v2  ;;  %v1184_v5 = vpop.f32.mrb[18].mxu0  ;;  %2983 = vmatprep.subr.bf16.mxu0 %v4126_v59 }
 0x1d7   : > { %v1185_v6 = vadd.f32 %v1184_v5, %v4165_v62  ;;  %v1186_v7 = vpop.f32.mrb[19].mxu0  ;;  %v1259_v10 = vmul.f32 0.088388346, %v1181_v40 }
 0x1d8   : > { %v1187_v9 = vadd.f32 %v1186_v7, %v4171_v2  ;;  %v1260_v12 = vmul.f32 0.088388346, %v1183_v37 }
 0x1d9   : > { %v1261_v11 = vmul.f32 0.088388346, %v1185_v6 }
 0x1da   : > { %v1262_v13 = vmul.f32 0.088388346, %v1187_v9  ;;  %v871_v22 = vpop.f32.mrb[16].mxu1 }
 0x1db   : > { %v1291_v17 = vpack.c.bf16 %v1261_v11, %v1259_v10  ;;  %v872_v38 = vadd.f32 %v871_v22, %v4184_v15  ;;  %v873_v26 = vpop.f32.mrb[17].mxu1 }
 0x1dc   : > { %v1292_v19 = vpack.c.bf16 %v1262_v13, %v1260_v12  ;;  %v1190_v20 = vpop.f32.mrb[20].mxu0  ;;  %2920 = vmatpush3.bf16.xpose.msra.mxu1 %v4124_v57  ;;  %v874_v57 = vadd.f32 %v873_v26, %v4187_v18  ;;  %v875_v29 = vpop.f32.mrb[18].mxu1 }
 0x1dd   : > { %v1191_v21 = vadd.f32 %v1190_v20, %v4165_v62  ;;  %v1192_v35 = vpop.f32.mrb[21].mxu0  ;;  %2927 = vmatprep.mubr.bf16.mxu1 %v1291_v17  ;;  %2984 = vmatpush3.bf16.xpose.msra.mxu0 %v4126_v59  ;;  %v876_v30 = vadd.f32 %v875_v29, %v4184_v15  ;;  %v877_v31 = vpop.f32.mrb[19].mxu1 }
 0x1de   : > { %v1193_v24 = vadd.f32 %v1192_v35, %v4171_v2  ;;  %v1194_v25 = vpop.f32.mrb[22].mxu0  ;;  %2991 = vmatprep.mubr.bf16.mxu0 %v1292_v19  ;;  %2921 = vmatprep.subr.bf16.mxu1 %v4136_v14  ;;  %v878_v34 = vadd.f32 %v877_v31, %v4187_v18 }
 0x1df   : > { %v1195_v27 = vadd.f32 %v1194_v25, %v4165_v62  ;;  %v1196_v28 = vpop.f32.mrb[23].mxu0  ;;  %2985 = vmatprep.subr.bf16.mxu0 %v4138_v16  ;;  %v4200_v32 = vmul.f32 0.088388346, %v1191_v21  ;;  %v4209_v43 = vpack.c.bf16 %v876_v30, %v872_v38 }
 0x1e0   : > { %v1197_v59 = vadd.f32 %v1196_v28, %v4171_v2  ;;  %v4205_v0 = vmul.f32 0.088388346, %v1193_v24  ;;  %v4213_v45 = vpack.c.bf16 %v878_v34, %v874_v57 }
 0x1e1   : > { %v4202_v33 = vmul.f32 0.088388346, %v1195_v27 }
 0x1e2   : > { %v4207_v42 = vmul.f32 0.088388346, %v1197_v59  ;;  %v881_v50 = vpop.f32.mrb[20].mxu1 }
 0x1e3   : > { %v1293_v44 = vpack.c.bf16 %v4202_v33, %v4200_v32  ;;  %v882_v53 = vadd.f32 %v881_v50, %v4184_v15  ;;  %v883_v54 = vpop.f32.mrb[21].mxu1 }
 0x1e4   : > { %v1294_v46 = vpack.c.bf16 %v4207_v42, %v4205_v0  ;;  %v1200_v47 = vpop.f32.mrb[24].mxu0  ;;  %2922 = vmatpush3.bf16.xpose.msra.mxu1 %v4136_v14  ;;  %v884_v14 = vadd.f32 %v883_v54, %v4187_v18  ;;  %v885_v58 = vpop.f32.mrb[22].mxu1 }
 0x1e5   : > { %v1201_v48 = vadd.f32 %v1200_v47, %v4165_v62  ;;  %v1202_v49 = vpop.f32.mrb[25].mxu0  ;;  %2986 = vmatpush3.bf16.xpose.msra.mxu0 %v4138_v16  ;;  %2923 = vmatprep.subr.bf16.mxu1 %v4148_v23  ;;  %v886_v16 = vadd.f32 %v885_v58, %v4184_v15  ;;  %v887_v61 = vpop.f32.mrb[23].mxu1 }
 0x1e6   : > { %v1203_v51 = vadd.f32 %v1202_v49, %v4171_v2  ;;  %v1204_v52 = vpop.f32.mrb[26].mxu0  ;;  %2987 = vmatprep.subr.bf16.mxu0 %v4150_v41  ;;  %v888_v40 = vadd.f32 %v887_v61, %v4187_v18 }
 0x1e7   : > { %v1205_v55 = vadd.f32 %v1204_v52, %v4165_v62  ;;  %v1206_v56 = vpop.f32.mrb[27].mxu0  ;;  %v4228_v1 = vmul.f32 0.088388346, %v1201_v48  ;;  %v4237_v5 = vpack.c.bf16 %v886_v16, %v882_v53 }
 0x1e8   : > { %v1207_v60 = vadd.f32 %v1206_v56, %v4171_v2  ;;  %v4233_v4 = vmul.f32 0.088388346, %v1203_v51  ;;  %v4241_v6 = vpack.c.bf16 %v888_v40, %v884_v14 }
 0x1e9   : > { %v4230_v3 = vmul.f32 0.088388346, %v1205_v55 }
 0x1ea   : > { %v4235_v37 = vmul.f32 0.088388346, %v1207_v60  ;;  %v891_v11 = vpop.f32.mrb[24].mxu1 }
 0x1eb   : > { %v1295_v36 = vpack.c.bf16 %v4230_v3, %v4228_v1  ;;  %v892_v17 = vadd.f32 %v891_v11, %v4184_v15  ;;  %v893_v19 = vpop.f32.mrb[25].mxu1 }
 0x1ec   : > { %v1296_v7 = vpack.c.bf16 %v4235_v37, %v4233_v4  ;;  %v1210_v8 = vpop.f32.mrb[28].mxu0  ;;  %2924 = vmatpush3.bf16.xpose.msra.mxu1 %v4148_v23  ;;  %v894_v23 = vadd.f32 %v893_v19, %v4187_v18  ;;  %v895_v35 = vpop.f32.mrb[26].mxu1 }
 0x1ed   : > { %v1211_v9 = vadd.f32 %v1210_v8, %v4165_v62  ;;  %v1212_v10 = vpop.f32.mrb[29].mxu0  ;;  %2988 = vmatpush3.bf16.xpose.msra.mxu0 %v4150_v41  ;;  %2925 = vmatprep.subr.bf16.mxu1 %v4167_v63  ;;  %v896_v41 = vadd.f32 %v895_v35, %v4184_v15  ;;  %v897_v24 = vpop.f32.mrb[27].mxu1 }
 0x1ee   : > { %v1213_v12 = vadd.f32 %v1212_v10, %v4171_v2  ;;  %v1214_v13 = vpop.f32.mrb[30].mxu0  ;;  %2989 = vmatprep.subr.bf16.mxu0 %v4173_v39  ;;  %v898_v26 = vadd.f32 %v897_v24, %v4187_v18 }
 0x1ef   : > { %v1215_v20 = vadd.f32 %v1214_v13, %v4165_v62  ;;  %v1216_v21 = vpop.f32.mrb[31].mxu0  ;;  %v4256_v25 = vmul.f32 0.088388346, %v1211_v9  ;;  %v4265_v57 = vpack.c.bf16 %v896_v41, %v892_v17 }
 0x1f0   : > { %v1217_v22 = vadd.f32 %v1216_v21, %v4171_v2  ;;  %v4261_v27 = vmul.f32 0.088388346, %v1213_v12  ;;  %v4269_v59 = vpack.c.bf16 %v898_v26, %v894_v23 }
 0x1f1   : > { %v4258_v38 = vmul.f32 0.088388346, %v1215_v20 }
 0x1f2   : > { %v4263_v28 = vmul.f32 0.088388346, %v1217_v22  ;;  %v901_v48 = vpop.f32.mrb[28].mxu1 }
 0x1f3   : > { %v1297_v29 = vpack.c.bf16 %v4258_v38, %v4256_v25  ;;  %v902_v51 = vadd.f32 %v901_v48, %v4184_v15  ;;  %v903_v52 = vpop.f32.mrb[29].mxu1 }
 0x1f4   : > { %v1298_v30 = vpack.c.bf16 %v4263_v28, %v4261_v27  ;;  %v1220_v31 = vpop.f32.mrb[32].mxu0  ;;  %2926 = vmatpush3.bf16.xpose.msra.mxu1 %v4167_v63  ;;  %v904_v55 = vadd.f32 %v903_v52, %v4187_v18  ;;  %v905_v63 = vpop.f32.mrb[30].mxu1 }
 0x1f5   : > { %v1221_v34 = vadd.f32 %v1220_v31, %v4165_v62  ;;  %v1222_v47 = vpop.f32.mrb[33].mxu0  ;;  %2990 = vmatpush3.bf16.xpose.msra.mxu0 %v4173_v39  ;;  %2943 = vmatprep.subr.bf16.mxu1 %v4209_v43  ;;  %v906_v14 = vadd.f32 %v905_v63, %v4184_v15  ;;  %v907_v39 = vpop.f32.mrb[31].mxu1 }
 0x1f6   : > { %v1223_v49 = vadd.f32 %v1222_v47, %v4171_v2  ;;  %v1224_v50 = vpop.f32.mrb[34].mxu0  ;;  %v908_v16 = vadd.f32 %v907_v39, %v4187_v18 }
 0x1f7   : > { %v1225_v53 = vadd.f32 %v1224_v50, %v4165_v62  ;;  %v1226_v54 = vpop.f32.mrb[35].mxu0  ;;  %v1275_v58 = vmul.f32 0.088388346, %v1221_v34  ;;  %v964_v3 = vpack.c.bf16 %v906_v14, %v902_v51 }
 0x1f8   : > { %v1227_v56 = vadd.f32 %v1226_v54, %v4171_v2  ;;  %v1276_v61 = vmul.f32 0.088388346, %v1223_v49  ;;  %v4287_v4 = vpack.c.bf16 %v908_v16, %v904_v55 }
 0x1f9   : > { %v1277_v60 = vmul.f32 0.088388346, %v1225_v53 }
 0x1fa   : > { %v1278_v1 = vmul.f32 0.088388346, %v1227_v56  ;;  %v911_v11 = vpop.f32.mrb[32].mxu1 }
 0x1fb   : > { %v1299_v40 = vpack.c.bf16 %v1277_v60, %v1275_v58  ;;  %2928 = vmatmul.mubr.bf16.vlgmr.msra.gmra.mrb[48].mxu1 %v1293_v44  ;;  %v912_v33 = vadd.f32 %v911_v11, %v4184_v15  ;;  %v913_v44 = vpop.f32.mrb[33].mxu1 }
 0x1fc   : > { %v1300_v37 = vpack.c.bf16 %v1278_v1, %v1276_v61  ;;  %v1230_v8 = vpop.f32.mrb[36].mxu0  ;;  %2931 = vmatprep.mubr.bf16.mxu1 %v1295_v36  ;;  %2992 = vmatmul.mubr.bf16.vlgmr.msra.gmra.mrb[48].mxu0 %v1294_v46  ;;  %v914_v0 = vadd.f32 %v913_v44, %v4187_v18  ;;  %v915_v42 = vpop.f32.mrb[34].mxu1 }
 0x1fd   : > { %v1231_v9 = vadd.f32 %v1230_v8, %v4165_v62  ;;  %v1232_v10 = vpop.f32.mrb[37].mxu0  ;;  %2995 = vmatprep.mubr.bf16.mxu0 %v1296_v7  ;;  %2944 = vmatpush3.bf16.msra.mxu1 %v4209_v43  ;;  %v916_v7 = vadd.f32 %v915_v42, %v4184_v15  ;;  %v917_v43 = vpop.f32.mrb[35].mxu1 }
 0x1fe   : > { %v1233_v12 = vadd.f32 %v1232_v10, %v4171_v2  ;;  %v1234_v32 = vpop.f32.mrb[38].mxu0  ;;  %2945 = vmatprep.subr.bf16.mxu1 %v4237_v5  ;;  %v918_v20 = vadd.f32 %v917_v43, %v4187_v18 }
 0x1ff   : > { %v1235_v36 = vadd.f32 %v1234_v32, %v4165_v62  ;;  %v1236_v13 = vpop.f32.mrb[39].mxu0  ;;  %v1279_v17 = vmul.f32 0.088388346, %v1231_v9  ;;  %v968_v35 = vpack.c.bf16 %v916_v7, %v912_v33 }
 0x200   : > { %v1237_v46 = vadd.f32 %v1236_v13, %v4171_v2  ;;  %v1280_v21 = vmul.f32 0.088388346, %v1233_v12  ;;  %v4304_v41 = vpack.c.bf16 %v918_v20, %v914_v0 }
 0x201   : > { %v1281_v19 = vmul.f32 0.088388346, %v1235_v36  ;;  %2946 = vmatpush3.bf16.msra.mxu1 %v4237_v5 }
 0x202   : > { %v1282_v23 = vmul.f32 0.088388346, %v1237_v46  ;;  %2947 = vmatprep.subr.bf16.mxu1 %v4265_v57  ;;  %v921_v5 = vpop.f32.mrb[36].mxu1 }
 0x203   : > { %v1301_v22 = vpack.c.bf16 %v1281_v19, %v1279_v17  ;;  %2932 = vmatmul.mubr.bf16.gmra.mrb[52].mxu1 %v1297_v29  ;;  %v922_v31 = vadd.f32 %v921_v5, %v4184_v15  ;;  %v923_v29 = vpop.f32.mrb[37].mxu1 }
 0x204   : > { %v1302_v24 = vpack.c.bf16 %v1282_v23, %v1280_v21  ;;  %v1240_v25 = vpop.f32.mrb[40].mxu0  ;;  %2935 = vmatprep.mubr.bf16.mxu1 %v1299_v40  ;;  %2996 = vmatmul.mubr.bf16.gmra.mrb[52].mxu0 %v1298_v30  ;;  %v924_v48 = vadd.f32 %v923_v29, %v4187_v18  ;;  %v925_v30 = vpop.f32.mrb[38].mxu1 }
 0x205   : > { %v1241_v38 = vadd.f32 %v1240_v25, %v4165_v62  ;;  %v1242_v26 = vpop.f32.mrb[41].mxu0  ;;  %2999 = vmatprep.mubr.bf16.mxu0 %v1300_v37  ;;  %2948 = vmatpush3.bf16.msra.mxu1 %v4265_v57  ;;  %v926_v50 = vadd.f32 %v925_v30, %v4184_v15  ;;  %v927_v51 = vpop.f32.mrb[39].mxu1 }
 0x206   : > { %v1243_v27 = vadd.f32 %v1242_v26, %v4171_v2  ;;  %v1244_v28 = vpop.f32.mrb[42].mxu0  ;;  %2949 = vmatprep.subr.bf16.mxu1 %v964_v3  ;;  %v928_v53 = vadd.f32 %v927_v51, %v4187_v18 }
 0x207   : > { %v1245_v34 = vadd.f32 %v1244_v28, %v4165_v62  ;;  %v1246_v47 = vpop.f32.mrb[43].mxu0  ;;  %v1283_v57 = vmul.f32 0.088388346, %v1241_v38  ;;  %v972_v63 = vpack.c.bf16 %v926_v50, %v922_v31 }
 0x208   : > { %v1247_v49 = vadd.f32 %v1246_v47, %v4171_v2  ;;  %v1284_v54 = vmul.f32 0.088388346, %v1243_v27  ;;  %v4315_v14 = vpack.c.bf16 %v928_v53, %v924_v48 }
 0x209   : > { %v1285_v52 = vmul.f32 0.088388346, %v1245_v34  ;;  %2950 = vmatpush3.bf16.msra.mxu1 %v964_v3 }
 0x20a   : > { %v1286_v55 = vmul.f32 0.088388346, %v1247_v49  ;;  %2951 = vmatprep.subr.bf16.mxu1 %v968_v35  ;;  %v931_v61 = vpop.f32.mrb[40].mxu1 }
 0x20b   : > { %v1303_v56 = vpack.c.bf16 %v1285_v52, %v1283_v57  ;;  %2936 = vmatmul.mubr.bf16.gmra.mrb[56].mxu1 %v1301_v22  ;;  %v932_v40 = vadd.f32 %v931_v61, %v4184_v15  ;;  %v933_v37 = vpop.f32.mrb[41].mxu1 }
 0x20c   : > { %v1304_v39 = vpack.c.bf16 %v1286_v55, %v1284_v54  ;;  %v1250_v58 = vpop.f32.mrb[44].mxu0  ;;  %3000 = vmatmul.mubr.bf16.gmra.mrb[56].mxu0 %v1302_v24  ;;  %v934_v10 = vadd.f32 %v933_v37, %v4187_v18  ;;  %v935_v11 = vpop.f32.mrb[42].mxu1 }
 0x20d   : > { %v1251_v60 = vadd.f32 %v1250_v58, %v4165_v62  ;;  %v1252_v16 = vpop.f32.mrb[45].mxu0  ;;  %2939 = vmatprep.mubr.bf16.mxu1 %v1303_v56  ;;  %2952 = vmatpush3.bf16.msra.mxu1 %v968_v35  ;;  %v936_v32 = vadd.f32 %v935_v11, %v4184_v15  ;;  %v937_v33 = vpop.f32.mrb[43].mxu1 }
 0x20e   : > { %v1253_v1 = vadd.f32 %v1252_v16, %v4171_v2  ;;  %v1254_v3 = vpop.f32.mrb[46].mxu0  ;;  %3003 = vmatprep.mubr.bf16.mxu0 %v1304_v39  ;;  %2953 = vmatprep.subr.bf16.mxu1 %v972_v63  ;;  %v938_v13 = vadd.f32 %v937_v33, %v4187_v18 }
 0x20f   : > { %v1255_v8 = vadd.f32 %v1254_v3, %v4165_v62  ;;  %v1256_v9 = vpop.f32.mrb[47].mxu0  ;;  %v1287_v44 = vmul.f32 0.088388346, %v1251_v60  ;;  %v976_v46 = vpack.c.bf16 %v936_v32, %v932_v40 }
 0x210   : > { %v1257_v12 = vadd.f32 %v1256_v9, %v4171_v2  ;;  %v1288_v0 = vmul.f32 0.088388346, %v1253_v1  ;;  %v4325_v43 = vpack.c.bf16 %v938_v13, %v934_v10 }
 0x211   : > { %v1289_v36 = vmul.f32 0.088388346, %v1255_v8  ;;  %2954 = vmatpush3.bf16.msra.mxu1 %v972_v63 }
 0x212   : > { %v1290_v42 = vmul.f32 0.088388346, %v1257_v12  ;;  %2955 = vmatprep.subr.bf16.mxu1 %v976_v46  ;;  %v941_v17 = vpop.f32.mrb[44].mxu1 }
 0x213   : > { %v1305_v7 = vpack.c.bf16 %v1289_v36, %v1287_v44  ;;  %v942_v2 = vadd.f32 %v941_v17, %v4184_v15  ;;  %v943_v19 = vpop.f32.mrb[45].mxu1 }
 0x214   : > { %v1306_v62 = vpack.c.bf16 %v1290_v42, %v1288_v0  ;;  %v944_v20 = vadd.f32 %v943_v19, %v4187_v18  ;;  %v945_v21 = vpop.f32.mrb[46].mxu1 }
 0x215   : > { %2940 = vmatmul.mubr.bf16.gmra.mrb[60].mxu1 %v1305_v7  ;;  %v946_v23 = vadd.f32 %v945_v21, %v4184_v15  ;;  %v947_v35 = vpop.f32.mrb[47].mxu1 }
 0x216   : > { %3004 = vmatmul.mubr.bf16.gmra.mrb[60].mxu0 %v1306_v62  ;;  %2956 = vmatpush3.bf16.msra.mxu1 %v976_v46  ;;  %v948_v22 = vadd.f32 %v947_v35, %v4187_v18 }
 0x217   : > { %v980_v24 = vpack.c.bf16 %v946_v23, %v942_v2 }
 0x218   : > { %v4331_v25 = vpack.c.bf16 %v948_v22, %v944_v20 }
 0x219   : > { %2957 = vmatprep.subr.bf16.mxu1 %v980_v24 }
 0x21a   : > { %2958 = vmatpush3.bf16.msra.mxu1 %v980_v24 }
 0x21b   : > { %3007 = vmatprep.subr.bf16.mxu1 %v4213_v45 }
 0x2ce   : > { %v4334_v38 = vpop.f32.mrb[48].mxu1 }
 0x2cf   : > { %v4336_v26 = vpop.f32.mrb[48].mxu0  ;;  %1440 = vmax.xlane.f32.xlu1 %v4334_v38  ;;  %v4339_v5 = vpop.f32.mrb[49].mxu1 }
 0x2d0   : > { %v4341_v27 = vpop.f32.mrb[49].mxu0  ;;  %1436 = vmax.xlane.f32.xlu0 %v4339_v5  ;;  %v4344_v15 = vpop.f32.mrb[50].mxu1 }
 0x2d1   : > { %v4346_v18 = vpop.f32.mrb[51].mxu1  ;;  %v4348_v28 = vpop.f32.mrb[50].mxu0 }
 0x2d2   : > { %v4350_v31 = vpop.f32.mrb[51].mxu0 }
 0x2d3   : > { %1442 = vmax.xlane.f32.xlu1 %v4344_v15 }
 0x2d4   : > { %1438 = vmax.xlane.f32.xlu0 %v4346_v18 }
 0x2d6   : > { %v4354_v29 = vpop.f32.mrb[52].mxu1 }
 0x2d7   : > { %v4356_v34 = vpop.f32.mrb[53].mxu1  ;;  %v4358_v47 = vpop.f32.mrb[52].mxu0 }
 0x2d8   : > { %v4360_v48 = vpop.f32.mrb[53].mxu0  ;;  %1444 = vmax.xlane.f32.xlu0 %v4356_v34  ;;  %v4363_v30 = vpop.f32.mrb[54].mxu1 }
 0x2d9   : > { %v4365_v49 = vpop.f32.mrb[55].mxu1  ;;  %v4367_v50 = vpop.f32.mrb[54].mxu0 }
 0x2da   : > { %v4369_v51 = vpop.f32.mrb[55].mxu0  ;;  %1446 = vmax.xlane.f32.xlu1 %v4365_v49 }
 0x2dc   : > { %1448 = vmax.xlane.f32.xlu0 %v4354_v29 }
 0x2de   : > { %1450 = vmax.xlane.f32.xlu1 %v4363_v30  ;;  %v4374_v57 = vpop.f32.mrb[56].mxu1 }
 0x2df   : > { %v4376_v52 = vpop.f32.mrb[57].mxu1  ;;  %v4378_v53 = vpop.f32.mrb[56].mxu0 }
 0x2e0   : > { %v4380_v54 = vpop.f32.mrb[57].mxu0  ;;  %1452 = vmax.xlane.f32.xlu0 %v4376_v52  ;;  %v4383_v55 = vpop.f32.mrb[58].mxu1 }
 0x2e1   : > { %v4385_v63 = vpop.f32.mrb[59].mxu1  ;;  %v4387_v56 = vpop.f32.mrb[58].mxu0 }
 0x2e2   : > { %v4389_v39 = vpop.f32.mrb[59].mxu0  ;;  %1454 = vmax.xlane.f32.xlu1 %v4385_v63 }
 0x2e4   : > { %1456 = vmax.xlane.f32.xlu0 %v4374_v57 }
 0x2e6   : > { %1458 = vmax.xlane.f32.xlu1 %v4383_v55 }
 0x2e8   : > { %v4394_v58 = vpop.f32.mrb[60].mxu1 }
 0x2e9   : > { %v4396_v60 = vpop.f32.mrb[61].mxu1  ;;  %v4398_v16 = vpop.f32.mrb[60].mxu0 }
 0x2ea   : > { %v4400_v61 = vpop.f32.mrb[61].mxu0  ;;  %1460 = vmax.xlane.f32.xlu0 %v4396_v60  ;;  %v4403_v1 = vpop.f32.mrb[62].mxu1 }
 0x2eb   : > { %v4405_v3 = vpop.f32.mrb[63].mxu1  ;;  %v4407_v40 = vpop.f32.mrb[62].mxu0 }
 0x2ec   : > { %v4409_v37 = vpop.f32.mrb[63].mxu0  ;;  %1462 = vmax.xlane.f32.xlu1 %v4405_v3 }
 0x2ee   : > { %1464 = vmax.xlane.f32.xlu0 %v4394_v58 }
 0x2f0   : > { %1466 = vmax.xlane.f32.xlu1 %v4403_v1 }
 0x2f2   : > { %1782 = vmax.xlane.f32.xlu0 %v4341_v27 }
 0x2f4   : > { %1784 = vmax.xlane.f32.xlu1 %v4350_v31 }
 0x2f6   : > { %1786 = vmax.xlane.f32.xlu0 %v4336_v26 }
 0x2f8   : > { %1788 = vmax.xlane.f32.xlu1 %v4348_v28 }
 0x2fa   : > { %1790 = vmax.xlane.f32.xlu0 %v4360_v48 }
 0x2fc   : > { %1792 = vmax.xlane.f32.xlu1 %v4369_v51 }
 0x2fe   : > { %1794 = vmax.xlane.f32.xlu0 %v4358_v47 }
 0x300   : > { %1796 = vmax.xlane.f32.xlu1 %v4367_v50 }
 0x302   : > { %1798 = vmax.xlane.f32.xlu0 %v4380_v54 }
 0x304   : > { %1800 = vmax.xlane.f32.xlu1 %v4389_v39 }
 0x306   : > { %1802 = vmax.xlane.f32.xlu0 %v4378_v53 }
 0x308   : > { %1804 = vmax.xlane.f32.xlu1 %v4387_v56 }
 0x30a   : > { %1806 = vmax.xlane.f32.xlu0 %v4400_v61 }
 0x30c   : > { %1812 = vmax.xlane.f32.xlu1 %v4407_v40 }
 0x30e   : > { %1810 = vmax.xlane.f32.xlu0 %v4398_v16 }
 0x310   : > { %1808 = vmax.xlane.f32.xlu1 %v4409_v37 }
 0x35c   : > { %v1441_v8 = vpop.xlane.xlu1 %1440 }
 0x35d   : > { %v1470_v9 = vsub.f32 %v4334_v38, %v1441_v8  ;;  %v1437_v10 = vpop.xlane.xlu0 %1436 }
 0x35e   : > { %v1468_v11 = vsub.f32 %v4339_v5, %v1437_v10 }
 0x35f   : > { %v1488_v33 = vmul.f32 1.442695, %v1470_v9 }
 0x360   : > { %v1484_v12 = vmul.f32 1.442695, %v1468_v11  ;;  %v1443_v32 = vpop.xlane.xlu1 %1442 }
 0x361   : > { %v1471_v44 = vsub.f32 %v4344_v15, %v1443_v32  ;;  %v1439_v36 = vpop.xlane.xlu0 %1438 }
 0x362   : > { %3250 = vpow2.f32 %v1484_v12  ;;  %v1469_v13 = vsub.f32 %v4346_v18, %v1439_v36 }
 0x363   : > { %3252 = vpow2.f32 %v1488_v33  ;;  %v1490_v42 = vmul.f32 1.442695, %v1471_v44 }
 0x364   : > { %v1486_v0 = vmul.f32 1.442695, %v1469_v13 }
 0x365   : > { %v1445_v46 = vpop.xlane.xlu0 %1444 }
 0x366   : > { %3254 = vpow2.f32 %v1486_v0  ;;  %v1472_v7 = vsub.f32 %v4356_v34, %v1445_v46 }
 0x367   : > { %v1447_v62 = vpop.xlane.xlu1 %1446  ;;  %3256 = vpow2.f32 %v1490_v42 }
 0x368   : > { %v1492_v17 = vmul.f32 1.442695, %v1472_v7  ;;  %v1473_v2 = vsub.f32 %v4365_v49, %v1447_v62 }
 0x369   : > { %v1449_v19 = vpop.xlane.xlu0 %1448 }
 0x36a   : > { %3258 = vpow2.f32 %v1492_v17  ;;  %v1494_v20 = vmul.f32 1.442695, %v1473_v2  ;;  %v1474_v21 = vsub.f32 %v4354_v29, %v1449_v19 }
 0x36b   : > { %v1451_v23 = vpop.xlane.xlu1 %1450 }
 0x36c   : > { %v4437_v35 = vpop.eup %3250  ;;  %v1496_v22 = vmul.f32 1.442695, %v1474_v21  ;;  %v1475_v24 = vsub.f32 %v4363_v30, %v1451_v23  ;;  %3260 = vpow2.f32 %v1494_v20 }
 0x36d   : > { %v1453_v38 = vpop.xlane.xlu0 %1452  ;;  %1516 = vadd.xlane.f32.xlu0 %v4437_v35  ;;  %v4442_v18 = vpop.eup %3252 }
 0x36e   : > { %3262 = vpow2.f32 %v1496_v22  ;;  %v1498_v5 = vmul.f32 1.442695, %v1475_v24  ;;  %v1476_v15 = vsub.f32 %v4376_v52, %v1453_v38 }
 0x36f   : > { %v1455_v34 = vpop.xlane.xlu1 %1454 }
 0x370   : > { %v4444_v49 = vpop.eup %3254  ;;  %v1500_v29 = vmul.f32 1.442695, %v1476_v15  ;;  %v1477_v8 = vsub.f32 %v4385_v63, %v1455_v34  ;;  %3264 = vpow2.f32 %v1498_v5 }
 0x371   : > { %v1457_v9 = vpop.xlane.xlu0 %1456  ;;  %1520 = vadd.xlane.f32.xlu0 %v4442_v18  ;;  %1518 = vadd.xlane.f32.xlu1 %v4444_v49  ;;  %v4450_v11 = vpop.eup %3256 }
 0x372   : > { %3266 = vpow2.f32 %v1500_v29  ;;  %v1502_v30 = vmul.f32 1.442695, %v1477_v8  ;;  %v1478_v10 = vsub.f32 %v4374_v57, %v1457_v9 }
 0x373   : > { %v1459_v52 = vpop.xlane.xlu1 %1458 }
 0x374   : > { %v4452_v12 = vpop.eup %3258  ;;  %v1504_v32 = vmul.f32 1.442695, %v1478_v10  ;;  %v1479_v33 = vsub.f32 %v4383_v55, %v1459_v52  ;;  %3268 = vpow2.f32 %v1502_v30 }
 0x375   : > { %1524 = vadd.xlane.f32.xlu0 %v4452_v12  ;;  %1522 = vadd.xlane.f32.xlu1 %v4450_v11 }
 0x376   : > { %3270 = vpow2.f32 %v1504_v32  ;;  %v1506_v63 = vmul.f32 1.442695, %v1479_v33  ;;  %v4457_v44 = vpop.eup %3260 }
 0x377   : > { %v1461_v36 = vpop.xlane.xlu0 %1460 }
 0x378   : > { %v4459_v13 = vpop.eup %3262  ;;  %v1480_v57 = vsub.f32 %v4396_v60, %v1461_v36  ;;  %3272 = vpow2.f32 %v1506_v63 }
 0x379   : > { %1528 = vadd.xlane.f32.xlu0 %v4459_v13  ;;  %1526 = vadd.xlane.f32.xlu1 %v4457_v44  ;;  %v1463_v0 = vpop.xlane.xlu1 %1462 }
 0x37a   : > { %v1508_v55 = vmul.f32 1.442695, %v1480_v57  ;;  %v1481_v42 = vsub.f32 %v4405_v3, %v1463_v0  ;;  %v4465_v46 = vpop.eup %3264 }
 0x37b   : > { %v1465_v7 = vpop.xlane.xlu0 %1464 }
 0x37c   : > { %v4467_v62 = vpop.eup %3266  ;;  %3274 = vpow2.f32 %v1508_v55  ;;  %v1510_v17 = vmul.f32 1.442695, %v1481_v42  ;;  %v1482_v2 = vsub.f32 %v4394_v58, %v1465_v7 }
 0x37d   : > { %1532 = vadd.xlane.f32.xlu0 %v4467_v62  ;;  %1530 = vadd.xlane.f32.xlu1 %v4465_v46  ;;  %v1467_v60 = vpop.xlane.xlu1 %1466 }
 0x37e   : > { %3276 = vpow2.f32 %v1510_v17  ;;  %v1512_v19 = vmul.f32 1.442695, %v1482_v2  ;;  %v1483_v20 = vsub.f32 %v4403_v1, %v1467_v60  ;;  %v4473_v21 = vpop.eup %3268 }
 0x37f   : > { %v1783_v3 = vpop.xlane.xlu0 %1782 }
 0x380   : > { %v4475_v23 = vpop.eup %3270  ;;  %3278 = vpow2.f32 %v1512_v19  ;;  %v1514_v22 = vmul.f32 1.442695, %v1483_v20  ;;  %v1814_v24 = vsub.f32 %v4341_v27, %v1783_v3 }
 0x381   : > { %1536 = vadd.xlane.f32.xlu0 %v4475_v23  ;;  %1534 = vadd.xlane.f32.xlu1 %v4473_v21  ;;  %v1785_v58 = vpop.xlane.xlu1 %1784 }
 0x382   : > { %3280 = vpow2.f32 %v1514_v22  ;;  %v1830_v38 = vmul.f32 1.442695, %v1814_v24  ;;  %v1815_v5 = vsub.f32 %v4350_v31, %v1785_v58  ;;  %v4481_v1 = vpop.eup %3272 }
 0x383   : > { %v1787_v15 = vpop.xlane.xlu0 %1786 }
 0x384   : > { %3282 = vpow2.f32 %v1830_v38  ;;  %v1832_v34 = vmul.f32 1.442695, %v1815_v5  ;;  %v1816_v29 = vsub.f32 %v4336_v26, %v1787_v15 }
 0x385   : > { %1538 = vadd.xlane.f32.xlu1 %v4481_v1  ;;  %v1789_v8 = vpop.xlane.xlu1 %1788 }
 0x386   : > { %v4485_v27 = vpop.eup %3274  ;;  %3284 = vpow2.f32 %v1832_v34  ;;  %v1834_v9 = vmul.f32 1.442695, %v1816_v29  ;;  %v1817_v30 = vsub.f32 %v4348_v28, %v1789_v8 }
 0x387   : > { %1540 = vadd.xlane.f32.xlu0 %v4485_v27  ;;  %v1791_v10 = vpop.xlane.xlu0 %1790 }
 0x388   : > { %v4489_v31 = vpop.eup %3276  ;;  %3286 = vpow2.f32 %v1834_v9  ;;  %v1836_v52 = vmul.f32 1.442695, %v1817_v30  ;;  %v1818_v32 = vsub.f32 %v4360_v48, %v1791_v10 }
 0x389   : > { %1542 = vadd.xlane.f32.xlu1 %v4489_v31  ;;  %v1793_v26 = vpop.xlane.xlu1 %1792 }
 0x38a   : > { %v4493_v33 = vpop.eup %3278  ;;  %3288 = vpow2.f32 %v1836_v52  ;;  %v1838_v63 = vmul.f32 1.442695, %v1818_v32  ;;  %v1819_v36 = vsub.f32 %v4369_v51, %v1793_v26 }
 0x38b   : > { %1544 = vadd.xlane.f32.xlu0 %v4493_v33  ;;  %v1795_v28 = vpop.xlane.xlu0 %1794 }
 0x38c   : > { %v4497_v57 = vpop.eup %3280  ;;  %3290 = vpow2.f32 %v1838_v63  ;;  %v1840_v0 = vmul.f32 1.442695, %v1819_v36  ;;  %v1820_v55 = vsub.f32 %v4358_v47, %v1795_v28 }
 0x38d   : > { %1546 = vadd.xlane.f32.xlu1 %v4497_v57  ;;  %v1797_v48 = vpop.xlane.xlu1 %1796 }
 0x38e   : > { %v4501_v42 = vpop.eup %3282  ;;  %3292 = vpow2.f32 %v1840_v0  ;;  %v1842_v7 = vmul.f32 1.442695, %v1820_v55  ;;  %v1821_v17 = vsub.f32 %v4367_v50, %v1797_v48 }
 0x38f   : > { %1862 = vadd.xlane.f32.xlu0 %v4501_v42  ;;  %v1799_v51 = vpop.xlane.xlu0 %1798 }
 0x390   : > { %v4505_v2 = vpop.eup %3284  ;;  %3294 = vpow2.f32 %v1842_v7  ;;  %v1844_v60 = vmul.f32 1.442695, %v1821_v17  ;;  %v1822_v19 = vsub.f32 %v4380_v54, %v1799_v51 }
 0x391   : > { %1864 = vadd.xlane.f32.xlu1 %v4505_v2  ;;  %v1801_v47 = vpop.xlane.xlu1 %1800 }
 0x392   : > { %v4509_v20 = vpop.eup %3286  ;;  %3296 = vpow2.f32 %v1844_v60  ;;  %v1846_v3 = vmul.f32 1.442695, %v1822_v19  ;;  %v1823_v22 = vsub.f32 %v4389_v39, %v1801_v47 }
 0x393   : > { %1866 = vadd.xlane.f32.xlu0 %v4509_v20  ;;  %v1803_v50 = vpop.xlane.xlu0 %1802 }
 0x394   : > { %v4513_v24 = vpop.eup %3288  ;;  %3298 = vpow2.f32 %v1846_v3  ;;  %v1848_v58 = vmul.f32 1.442695, %v1823_v22  ;;  %v1824_v38 = vsub.f32 %v4378_v53, %v1803_v50 }
 0x395   : > { %1868 = vadd.xlane.f32.xlu1 %v4513_v24  ;;  %v1805_v54 = vpop.xlane.xlu1 %1804 }
 0x396   : > { %v4517_v5 = vpop.eup %3290  ;;  %3300 = vpow2.f32 %v1848_v58  ;;  %v1850_v15 = vmul.f32 1.442695, %v1824_v38  ;;  %v1825_v34 = vsub.f32 %v4387_v56, %v1805_v54 }
 0x397   : > { %1870 = vadd.xlane.f32.xlu0 %v4517_v5  ;;  %v1807_v39 = vpop.xlane.xlu0 %1806 }
 0x398   : > { %v4521_v29 = vpop.eup %3292  ;;  %3302 = vpow2.f32 %v1850_v15  ;;  %v1852_v8 = vmul.f32 1.442695, %v1825_v34  ;;  %v1826_v9 = vsub.f32 %v4400_v61, %v1807_v39 }
 0x399   : > { %1872 = vadd.xlane.f32.xlu1 %v4521_v29  ;;  %v1813_v53 = vpop.xlane.xlu1 %1812 }
 0x39a   : > { %v4525_v30 = vpop.eup %3294  ;;  %3304 = vpow2.f32 %v1852_v8  ;;  %v1854_v10 = vmul.f32 1.442695, %v1826_v9  ;;  %v1829_v61 = vsub.f32 %v4407_v40, %v1813_v53 }
 0x39b   : > { %1874 = vadd.xlane.f32.xlu0 %v4525_v30  ;;  %v1811_v52 = vpop.xlane.xlu0 %1810 }
 0x39c   : > { %v4528_v56 = vpop.eup %3296  ;;  %3306 = vpow2.f32 %v1854_v10  ;;  %v1828_v32 = vsub.f32 %v4398_v16, %v1811_v52  ;;  %v1860_v16 = vmul.f32 1.442695, %v1829_v61 }
 0x39d   : > { %1876 = vadd.xlane.f32.xlu1 %v4528_v56  ;;  %v1809_v26 = vpop.xlane.xlu1 %1808 }
 0x39e   : > { %v4532_v63 = vpop.eup %3298  ;;  %v1858_v36 = vmul.f32 1.442695, %v1828_v32  ;;  %v1827_v28 = vsub.f32 %v4409_v37, %v1809_v26 }
 0x39f   : > { %1878 = vadd.xlane.f32.xlu0 %v4532_v63 }
 0x3a0   : > { %v4537_v0 = vpop.eup %3300  ;;  %3308 = vpow2.f32 %v1858_v36  ;;  %v1856_v55 = vmul.f32 1.442695, %v1827_v28 }
 0x3a1   : > { %1880 = vadd.xlane.f32.xlu1 %v4537_v0 }
 0x3a2   : > { %v4540_v48 = vpop.eup %3302  ;;  %3310 = vpow2.f32 %v1856_v55 }
 0x3a3   : > { %1882 = vadd.xlane.f32.xlu0 %v4540_v48  ;;  %3312 = vpow2.f32 %v1860_v16 }
 0x3a4   : > { %v4543_v7 = vpop.eup %3304 }
 0x3a5   : > { %1884 = vadd.xlane.f32.xlu1 %v4543_v7 }
 0x3a6   : > { %v4546_v40 = vpop.eup %3306 }
 0x3a7   : > { %1886 = vadd.xlane.f32.xlu0 %v4546_v40 }
 0x3aa   : > { %v4549_v37 = vpop.eup %3308 }
 0x3ab   : > { %1890 = vadd.xlane.f32.xlu0 %v4549_v37 }
 0x3ac   : > { %v4552_v17 = vpop.eup %3310 }
 0x3ad   : > { %1888 = vadd.xlane.f32.xlu1 %v4552_v17  ;;  %v4555_v51 = vpop.eup %3312 }
 0x3b1   : > { %1892 = vadd.xlane.f32.xlu1 %v4555_v51 }
 0x3fa   : > { %v1517_v60 = vpop.xlane.xlu0 %1516 }
 0x3fb   : > { %3314 = vrcp.f32 %v1517_v60 }
 0x3fe   : > { %v1521_v19 = vpop.xlane.xlu0 %1520  ;;  %v1519_v47 = vpop.xlane.xlu1 %1518 }
 0x3ff   : > { %3316 = vrcp.f32 %v1519_v47 }
 0x400   : > { %3318 = vrcp.f32 %v1521_v19 }
 0x402   : > { %v1525_v3 = vpop.xlane.xlu0 %1524  ;;  %v1523_v22 = vpop.xlane.xlu1 %1522 }
 0x403   : > { %3320 = vrcp.f32 %v1523_v22 }
 0x404   : > { %3322 = vrcp.f32 %v1525_v3 }
 0x405   : > { %v3315_v38 = vpop.eup %3314 }
 0x406   : > { %v1529_v50 = vpop.xlane.xlu0 %1528  ;;  %v1527_v58 = vpop.xlane.xlu1 %1526  ;;  %v1564_v39 = vmul.f32 %v3315_v38, %v4437_v35 }
 0x407   : > { %3324 = vrcp.f32 %v1527_v58 }
 0x408   : > { %3326 = vrcp.f32 %v1529_v50 }
 0x409   : > { %v3317_v54 = vpop.eup %3316 }
 0x40a   : > { %v1533_v15 = vpop.xlane.xlu0 %1532  ;;  %v1531_v34 = vpop.xlane.xlu1 %1530  ;;  %v1565_v8 = vmul.f32 %v3317_v54, %v4444_v49 }
 0x40b   : > { %v3319_v9 = vpop.eup %3318  ;;  %3328 = vrcp.f32 %v1531_v34 }
 0x40c   : > { %v1580_v53 = vpack.c.bf16 %v1565_v8, %v1564_v39  ;;  %3330 = vrcp.f32 %v1533_v15  ;;  %v1566_v26 = vmul.f32 %v3319_v9, %v4442_v18 }
 0x40d   : > { %v3321_v10 = vpop.eup %3320 }
 0x40e   : > { %v1537_v52 = vpop.xlane.xlu0 %1536  ;;  %v1535_v32 = vpop.xlane.xlu1 %1534  ;;  %v1567_v61 = vmul.f32 %v3321_v10, %v4450_v11  ;;  %2959 = vmatprep.mubr.bf16.mxu1 %v1580_v53 }
 0x40f   : > { %v3323_v36 = vpop.eup %3322  ;;  %3332 = vrcp.f32 %v1535_v32 }
 0x410   : > { %3334 = vrcp.f32 %v1537_v52  ;;  %v1581_v28 = vpack.c.bf16 %v1567_v61, %v1566_v26  ;;  %v1568_v49 = vmul.f32 %v3323_v36, %v4452_v12 }
 0x411   : > { %v3325_v55 = vpop.eup %3324 }
 0x412   : > { %v1539_v35 = vpop.xlane.xlu1 %1538  ;;  %2960 = vmatmul.mubr.bf16.vlgmr.msra.gmra.mrb[64].mxu1 %v1581_v28  ;;  %v1569_v16 = vmul.f32 %v3325_v55, %v4457_v44  ;;  %v3327_v60 = vpop.eup %3326 }
 0x413   : > { %3336 = vrcp.f32 %v1539_v35  ;;  %3008 = vmatpush3.bf16.msra.mxu1 %v4213_v45  ;;  %v1570_v3 = vmul.f32 %v3327_v60, %v4459_v13 }
 0x414   : > { %v1541_v19 = vpop.xlane.xlu0 %1540  ;;  %3009 = vmatprep.subr.bf16.mxu1 %v4241_v6  ;;  %v1582_v18 = vpack.c.bf16 %v1569_v16, %v1568_v49 }
 0x415   : > { %3338 = vrcp.f32 %v1541_v19  ;;  %v3329_v11 = vpop.eup %3328 }
 0x416   : > { %v1543_v47 = vpop.xlane.xlu1 %1542  ;;  %2963 = vmatprep.mubr.bf16.mxu1 %v1582_v18  ;;  %v1571_v22 = vmul.f32 %v3329_v11, %v4465_v46  ;;  %v3331_v50 = vpop.eup %3330 }
 0x417   : > { %3340 = vrcp.f32 %v1543_v47  ;;  %3010 = vmatpush3.bf16.msra.mxu1 %v4241_v6  ;;  %v1572_v54 = vmul.f32 %v3331_v50, %v4467_v62 }
 0x418   : > { %v1545_v12 = vpop.xlane.xlu0 %1544  ;;  %3011 = vmatprep.subr.bf16.mxu1 %v4269_v59  ;;  %v1583_v45 = vpack.c.bf16 %v1571_v22, %v1570_v3 }
 0x419   : > { %3342 = vrcp.f32 %v1545_v12  ;;  %v3333_v44 = vpop.eup %3332 }
 0x41a   : > { %v1547_v58 = vpop.xlane.xlu1 %1546  ;;  %v3335_v38 = vpop.eup %3334  ;;  %2964 = vmatmul.mubr.bf16.gmra.mrb[68].mxu1 %v1583_v45  ;;  %v1573_v15 = vmul.f32 %v3333_v44, %v4473_v21 }
 0x41b   : > { %3344 = vrcp.f32 %v1547_v58  ;;  %3012 = vmatpush3.bf16.msra.mxu1 %v4269_v59  ;;  %v1574_v39 = vmul.f32 %v3335_v38, %v4475_v23 }
 0x41c   : > { %v1863_v13 = vpop.xlane.xlu0 %1862  ;;  %3013 = vmatprep.subr.bf16.mxu1 %v4287_v4  ;;  %v1584_v6 = vpack.c.bf16 %v1573_v15, %v1572_v54 }
 0x41d   : > { %v3337_v46 = vpop.eup %3336  ;;  %3346 = vrcp.f32 %v1863_v13 }
 0x41e   : > { %v1865_v34 = vpop.xlane.xlu1 %1864  ;;  %v1575_v8 = vmul.f32 %v3337_v46, %v4481_v1  ;;  %2967 = vmatprep.mubr.bf16.mxu1 %v1584_v6 }
 0x41f   : > { %v3339_v9 = vpop.eup %3338  ;;  %3348 = vrcp.f32 %v1865_v34  ;;  %3014 = vmatpush3.bf16.msra.mxu1 %v4287_v4 }
 0x420   : > { %v1867_v62 = vpop.xlane.xlu0 %1866  ;;  %v1585_v21 = vpack.c.bf16 %v1575_v8, %v1574_v39  ;;  %3015 = vmatprep.subr.bf16.mxu1 %v4304_v41  ;;  %v1576_v10 = vmul.f32 %v3339_v9, %v4485_v27 }
 0x421   : > { %v3341_v53 = vpop.eup %3340  ;;  %3350 = vrcp.f32 %v1867_v62 }
 0x422   : > { %v1869_v59 = vpop.xlane.xlu1 %1868  ;;  %v1577_v52 = vmul.f32 %v3341_v53, %v4489_v31  ;;  %2968 = vmatmul.mubr.bf16.gmra.mrb[72].mxu1 %v1585_v21 }
 0x423   : > { %v3343_v32 = vpop.eup %3342  ;;  %3352 = vrcp.f32 %v1869_v59  ;;  %3016 = vmatpush3.bf16.msra.mxu1 %v4304_v41 }
 0x424   : > { %v1871_v23 = vpop.xlane.xlu0 %1870  ;;  %v1586_v1 = vpack.c.bf16 %v1577_v52, %v1576_v10  ;;  %3017 = vmatprep.subr.bf16.mxu1 %v4315_v14  ;;  %v1578_v61 = vmul.f32 %v3343_v32, %v4493_v33  ;;  %v3235_v52 = vld [vmem:[#allocation11] sm:$0xff]   ;;  %v3236_v32 = vld [vmem:[#allocation11 + $0x48] sm:$0xff]  }
 0x425   : > { %v3345_v26 = vpop.eup %3344  ;;  %3354 = vrcp.f32 %v1871_v23  ;;  %v3237_v23 = vld [vmem:[#allocation11 + $0x8] sm:$0xff]  }
 0x426   : > { %2971 = vmatprep.mubr.bf16.mxu1 %v1586_v1  ;;  %v1873_v4 = vpop.xlane.xlu1 %1872  ;;  %v1579_v36 = vmul.f32 %v3345_v26, %v4497_v57  ;;  %v3240_v1 = vld [vmem:[#allocation11 + $0x58] sm:$0xff]  }
 0x427   : > { %v3347_v27 = vpop.eup %3346  ;;  %3356 = vrcp.f32 %v1873_v4  ;;  %3018 = vmatpush3.bf16.msra.mxu1 %v4315_v14  ;;  %v3241_v26 = vld [vmem:[#allocation11 + $0x18] sm:$0xff]   ;;  %v3244_v4 = vld [vmem:[#allocation11 + $0x68] sm:$0xff]  }
 0x428   : > { %v1875_v31 = vpop.xlane.xlu0 %1874  ;;  %v1587_v28 = vpack.c.bf16 %v1579_v36, %v1578_v61  ;;  %3019 = vmatprep.subr.bf16.mxu1 %v4325_v43  ;;  %v1910_v35 = vmul.f32 %v3347_v27, %v4501_v42  ;;  %v3245_v61 = vld [vmem:[#allocation11 + $0x28] sm:$0xff]   ;;  %v3246_v36 = vld [vmem:[#allocation11 + $0x70] sm:$0xff]  }
 0x429   : > { %v3349_v55 = vpop.eup %3348  ;;  %3358 = vrcp.f32 %v1875_v31  ;;  %v3247_v27 = vld [vmem:[#allocation11 + $0x30] sm:$0xff]   ;;  %v3248_v31 = vld [vmem:[#allocation11 + $0x78] sm:$0xff]  }
 0x42a   : > { %v1877_v41 = vpop.xlane.xlu1 %1876  ;;  %v1911_v49 = vmul.f32 %v3349_v55, %v4505_v2  ;;  %2972 = vmatmul.mubr.bf16.gmra.mrb[76].mxu1 %v1587_v28  ;;  %v3249_v28 = vld [vmem:[#allocation11 + $0x38] sm:$0xff]  }
 0x42b   : > { %v3351_v16 = vpop.eup %3350  ;;  %3360 = vrcp.f32 %v1877_v41  ;;  %3020 = vmatpush3.bf16.msra.mxu1 %v4325_v43 }
 0x42c   : > { %v1879_v33 = vpop.xlane.xlu0 %1878  ;;  %v1926_v57 = vpack.c.bf16 %v1911_v49, %v1910_v35  ;;  %3021 = vmatprep.subr.bf16.mxu1 %v4331_v25  ;;  %v1912_v14 = vmul.f32 %v3351_v16, %v4509_v20 }
 0x42d   : > { %v3353_v60 = vpop.eup %3352  ;;  %3362 = vrcp.f32 %v1879_v33 }
 0x42e   : > { %v1913_v19 = vmul.f32 %v3353_v60, %v4513_v24  ;;  %3023 = vmatprep.mubr.bf16.mxu1 %v1926_v57  ;;  %v1881_v18 = vpop.xlane.xlu1 %1880 }
 0x42f   : > { %v3355_v42 = vpop.eup %3354  ;;  %3364 = vrcp.f32 %v1881_v18  ;;  %3022 = vmatpush3.bf16.msra.mxu1 %v4331_v25 }
 0x430   : > { %v1883_v2 = vpop.xlane.xlu0 %1882  ;;  %v1927_v11 = vpack.c.bf16 %v1913_v19, %v1912_v14  ;;  %v1914_v3 = vmul.f32 %v3355_v42, %v4517_v5 }
 0x431   : > { %v3357_v47 = vpop.eup %3356  ;;  %3366 = vrcp.f32 %v1883_v2 }
 0x432   : > { %v1885_v43 = vpop.xlane.xlu1 %1884  ;;  %v1915_v22 = vmul.f32 %v3357_v47, %v4521_v29  ;;  %3024 = vmatmul.mubr.bf16.vlgmr.msra.gmra.mrb[80].mxu1 %v1927_v11 }
 0x433   : > { %v3359_v50 = vpop.eup %3358  ;;  %3368 = vrcp.f32 %v1885_v43 }
 0x434   : > { %v1887_v20 = vpop.xlane.xlu0 %1886  ;;  %v1928_v24 = vpack.c.bf16 %v1915_v22, %v1914_v3  ;;  %v1916_v45 = vmul.f32 %v3359_v50, %v4525_v30 }
 0x435   : > { %v3361_v12 = vpop.eup %3360  ;;  %3370 = vrcp.f32 %v1887_v20 }
 0x436   : > { %3027 = vmatprep.mubr.bf16.mxu1 %v1928_v24  ;;  %v1917_v25 = vmul.f32 %v3361_v12, %v4528_v56 }
 0x437   : > { %v3363_v44 = vpop.eup %3362 }
 0x438   : > { %v1929_v58 = vpack.c.bf16 %v1917_v25, %v1916_v45  ;;  %v1891_v54 = vpop.xlane.xlu0 %1890  ;;  %v1918_v5 = vmul.f32 %v3363_v44, %v4532_v63 }
 0x439   : > { %v3365_v38 = vpop.eup %3364 }
 0x43a   : > { %v1889_v15 = vpop.xlane.xlu1 %1888  ;;  %v1919_v29 = vmul.f32 %v3365_v38, %v4537_v0  ;;  %3028 = vmatmul.mubr.bf16.gmra.mrb[84].mxu1 %v1929_v58 }
 0x43b   : > { %v3367_v13 = vpop.eup %3366  ;;  %3372 = vrcp.f32 %v1889_v15 }
 0x43c   : > { %v1930_v46 = vpack.c.bf16 %v1919_v29, %v1918_v5  ;;  %3374 = vrcp.f32 %v1891_v54  ;;  %v1920_v56 = vmul.f32 %v3367_v13, %v4540_v48 }
 0x43d   : > { %v3369_v6 = vpop.eup %3368 }
 0x43e   : > { %3031 = vmatprep.mubr.bf16.mxu1 %v1930_v46  ;;  %v1893_v30 = vpop.xlane.xlu1 %1892  ;;  %v1921_v34 = vmul.f32 %v3369_v6, %v4543_v7  ;;  %v3234_v7 = vld [vmem:[#allocation11 + $0x40] sm:$0xff]  }
 0x43f   : > { %3376 = vrcp.f32 %v1893_v30  ;;  %v3371_v8 = vpop.eup %3370  ;;  %2847 = vmatprep.subr.bf16.mxu0 %v3234_v7 }
 0x440   : > { %v1931_v39 = vpack.c.bf16 %v1921_v34, %v1920_v56  ;;  %v1922_v63 = vmul.f32 %v3371_v8, %v4546_v40  ;;  %2848 = vmatpush3.bf16.msra.mxu0 %v3235_v52  ;;  %v3238_v40 = vld [vmem:[#allocation11 + $0x50] sm:$0xff]   ;;  %v4608_v52 = vld [vmem:[%s4910_s7] ss:$0 sm:$0xff] }
 0x441   : > { %2849 = vmatprep.subr.bf16.mxu0 %v3236_v32 }
 0x442   : > { %3032 = vmatmul.mubr.bf16.gmra.mrb[88].mxu1 %v1931_v39 }
 0x444   : > { %2850 = vmatpush3.bf16.msra.mxu0 %v3237_v23 }
 0x445   : > { %v3373_v9 = vpop.eup %3372  ;;  %2851 = vmatprep.subr.bf16.mxu0 %v3238_v40 }
 0x446   : > { %v1923_v0 = vmul.f32 %v3373_v9, %v4552_v17  ;;  %v3375_v62 = vpop.eup %3374  ;;  %v3239_v17 = vld [vmem:[#allocation11 + $0x10] sm:$0xff]  }
 0x447   : > { %v1924_v59 = vmul.f32 %v3375_v62, %v4549_v37  ;;  %v3242_v37 = vld [vmem:[#allocation11 + $0x60] sm:$0xff]  }
 0x448   : > { %v1932_v21 = vpack.c.bf16 %v1923_v0, %v1922_v63  ;;  %2852 = vmatpush3.bf16.msra.mxu0 %v3239_v17 }
 0x449   : > { %v3377_v53 = vpop.eup %3376  ;;  %2853 = vmatprep.subr.bf16.mxu0 %v3240_v1 }
 0x44a   : > { %3035 = vmatprep.mubr.bf16.mxu1 %v1932_v21  ;;  %v1925_v10 = vmul.f32 %v3377_v53, %v4555_v51  ;;  %v3243_v51 = vld [vmem:[#allocation11 + $0x20] sm:$0xff]  }
 0x44c   : > { %v1933_v48 = vpack.c.bf16 %v1925_v10, %v1924_v59  ;;  %2854 = vmatpush3.bf16.msra.mxu0 %v3241_v26 }
 0x44d   : > { %2855 = vmatprep.subr.bf16.mxu0 %v3242_v37 }
 0x44e   : > { %3036 = vmatmul.mubr.bf16.gmra.mrb[92].mxu1 %v1933_v48 }
 0x450   : > { %2856 = vmatpush3.bf16.msra.mxu0 %v3243_v51  ;;  %v3410_v51 = vld [vmem:[%s3991_s26] sm:$0xff] }
 0x451   : > { %2857 = vmatprep.subr.bf16.mxu0 %v3244_v4 }
 0x454   : > { %2858 = vmatpush3.bf16.msra.mxu0 %v3245_v61 }
 0x455   : > { %2859 = vmatprep.subr.bf16.mxu0 %v3246_v36  ;;  %v3411_v36 = vld [vmem:[%s3991_s26 + $0x8] sm:$0xff] }
 0x458   : > { %2860 = vmatpush3.bf16.msra.mxu0 %v3247_v27 }
 0x459   : > { %2861 = vmatprep.subr.bf16.mxu0 %v3248_v31 }
 0x45c   : > { %2862 = vmatpush3.bf16.msra.mxu0 %v3249_v28 }
 0x4e5   : > { %v2961_v55 = vpop.f32.mrb[64].mxu1 }
 0x4e6   : > { %v1622_v41 = vpop.f32.mrb[65].mxu1 }
 0x4e7   : > { %v2962_v35 = vpop.f32.mrb[66].mxu1 }
 0x4e8   : > { %v2033_v49 = vpack.c.bf16 %v2962_v35, %v2961_v55  ;;  %v1625_v16 = vpop.f32.mrb[67].mxu1 }
 0x4e9   : > { %v2031_v33 = vpack.c.bf16 %v1625_v16, %v1622_v41 }
 0x4ed   : > { %v2965_v57 = vpop.f32.mrb[68].mxu1 }
 0x4ee   : > { %v1638_v60 = vpop.f32.mrb[69].mxu1 }
 0x4ef   : > { %v2966_v14 = vpop.f32.mrb[70].mxu1 }
 0x4f0   : > { %v2037_v19 = vpack.c.bf16 %v2966_v14, %v2965_v57  ;;  %v1641_v18 = vpop.f32.mrb[71].mxu1  ;;  %v3413_v14 = vld [vmem:[%s3991_s26 + $0x18] sm:$0xff] }
 0x4f1   : > { %v2035_v42 = vpack.c.bf16 %v1641_v18, %v1638_v60 }
 0x4f5   : > { %v2969_v2 = vpop.f32.mrb[72].mxu1 }
 0x4f6   : > { %v1654_v11 = vpop.f32.mrb[73].mxu1 }
 0x4f7   : > { %v2970_v47 = vpop.f32.mrb[74].mxu1 }
 0x4f8   : > { %v2041_v43 = vpack.c.bf16 %v2970_v47, %v2969_v2  ;;  %v1657_v3 = vpop.f32.mrb[75].mxu1 }
 0x4f9   : > { %v2039_v22 = vpack.c.bf16 %v1657_v3, %v1654_v11 }
 0x4fd   : > { %v2973_v50 = vpop.f32.mrb[76].mxu1 }
 0x4fe   : > { %v1670_v20 = vpop.f32.mrb[77].mxu1 }
 0x4ff   : > { %v2974_v24 = vpop.f32.mrb[78].mxu1 }
 0x500   : > { %v2045_v12 = vpack.c.bf16 %v2974_v24, %v2973_v50  ;;  %v1673_v45 = vpop.f32.mrb[79].mxu1  ;;  %v3415_v24 = vld [vmem:[%s3991_s26 + $0x28] sm:$0xff] }
 0x501   : > { %v2043_v25 = vpack.c.bf16 %v1673_v45, %v1670_v20 }
 0x505   : > { %v3025_v44 = vpop.f32.mrb[80].mxu1 }
 0x506   : > { %v1968_v58 = vpop.f32.mrb[81].mxu1 }
 0x507   : > { %v3026_v38 = vpop.f32.mrb[82].mxu1 }
 0x508   : > { %v2034_v54 = vpack.c.bf16 %v3026_v38, %v3025_v44  ;;  %v1971_v15 = vpop.f32.mrb[83].mxu1 }
 0x509   : > { %v2032_v5 = vpack.c.bf16 %v1971_v15, %v1968_v58 }
 0x50b   : > { %2214 = vmatprep.mubr.bf16.mxu0 %v2032_v5  ;;  %v3416_v5 = vld [vmem:[%s3991_s26 + $0x30] sm:$0xff] }
 0x50c   : > { %2215 = vmatmul.mubr.bf16.vlgmr.msra.gmra.mrb[64].mxu0 %v2031_v33  ;;  %v3412_v33 = vld [vmem:[%s3991_s26 + $0x10] sm:$0xff] }
 0x50d   : > { %v3029_v29 = vpop.f32.mrb[84].mxu1  ;;  %2222 = vmatprep.mubr.bf16.mxu0 %v2034_v54 }
 0x50e   : > { %v1984_v13 = vpop.f32.mrb[85].mxu1 }
 0x50f   : > { %v3030_v46 = vpop.f32.mrb[86].mxu1 }
 0x510   : > { %v2038_v6 = vpack.c.bf16 %v3030_v46, %v3029_v29  ;;  %v1987_v30 = vpop.f32.mrb[87].mxu1  ;;  %v3417_v46 = vld [vmem:[%s3991_s26 + $0x38] sm:$0xff] }
 0x511   : > { %v2036_v56 = vpack.c.bf16 %v1987_v30, %v1984_v13 }
 0x514   : > { %2223 = vmatmul.mubr.bf16.gmra.mrb[68].mxu0 %v2033_v49 }
 0x515   : > { %v3033_v34 = vpop.f32.mrb[88].mxu1  ;;  %2230 = vmatprep.mubr.bf16.mxu0 %v2036_v56 }
 0x516   : > { %v2000_v39 = vpop.f32.mrb[89].mxu1 }
 0x517   : > { %v3034_v8 = vpop.f32.mrb[90].mxu1 }
 0x518   : > { %v2042_v9 = vpack.c.bf16 %v3034_v8, %v3033_v34  ;;  %v2003_v63 = vpop.f32.mrb[91].mxu1 }
 0x519   : > { %v2040_v0 = vpack.c.bf16 %v2003_v63, %v2000_v39 }
 0x51c   : > { %2231 = vmatmul.mubr.bf16.gmra.mrb[72].mxu0 %v2035_v42 }
 0x51d   : > { %2238 = vmatprep.mubr.bf16.mxu0 %v2038_v6 }
 0x521   : > { %v3037_v62 = vpop.f32.mrb[92].mxu1 }
 0x522   : > { %v2016_v21 = vpop.f32.mrb[93].mxu1 }
 0x523   : > { %v3038_v53 = vpop.f32.mrb[94].mxu1 }
 0x524   : > { %v2046_v59 = vpack.c.bf16 %v3038_v53, %v3037_v62  ;;  %v2019_v10 = vpop.f32.mrb[95].mxu1  ;;  %2239 = vmatmul.mubr.bf16.gmra.mrb[76].mxu0 %v2037_v19  ;;  %v3419_v53 = vld [vmem:[%s3991_s26 + $0x48] sm:$0xff] }
 0x525   : > { %v2044_v48 = vpack.c.bf16 %v2019_v10, %v2016_v21  ;;  %2246 = vmatprep.mubr.bf16.mxu0 %v2040_v0  ;;  %v3418_v0 = vld [vmem:[%s3991_s26 + $0x40] sm:$0xff] }
 0x52c   : > { %2247 = vmatmul.mubr.bf16.gmra.mrb[80].mxu0 %v2039_v22  ;;  %v3414_v22 = vld [vmem:[%s3991_s26 + $0x20] sm:$0xff] }
 0x52d   : > { %2254 = vmatprep.mubr.bf16.mxu0 %v2042_v9 }
 0x534   : > { %2255 = vmatmul.mubr.bf16.gmra.mrb[84].mxu0 %v2041_v43 }
 0x535   : > { %2262 = vmatprep.mubr.bf16.mxu0 %v2044_v48 }
 0x53c   : > { %2263 = vmatmul.mubr.bf16.gmra.mrb[88].mxu0 %v2043_v25 }
 0x53d   : > { %2270 = vmatprep.mubr.bf16.mxu0 %v2046_v59 }
 0x544   : > { %2271 = vmatmul.mubr.bf16.gmra.mrb[92].mxu0 %v2045_v12 }
 0x5df   : > { %v2863_v7 = vpop.f32.mrb[64].mxu0 }
 0x5e0   : > { %v2864_v32 = vpop.f32.mrb[65].mxu0 }
 0x5e1   : > { %v2865_v23 = vadd.f32 %v2864_v32, %v2863_v7  ;;  %v2866_v40 = vpop.f32.mrb[66].mxu0 }
 0x5e2   : > { %v2867_v17 = vpop.f32.mrb[67].mxu0 }
 0x5e3   : > { %v2217_v1 = vadd.f32 %v2865_v23, %v4608_v52  ;;  %v2868_v26 = vadd.f32 %v2867_v17, %v2866_v40 }
 0x5e5   : > { %v2220_v37 = vadd.f32 %v2868_v26, %v4608_v52  ;;  %v4613_v4 = vadd.f32 %v3410_v51, %v2217_v1  ;;  %v3420_v1 = vld [vmem:[%s3991_s26 + $0x50] sm:$0xff]  ;;  %v3421_v51 = vld [vmem:[%s3991_s26 + $0x58] sm:$0xff] }
 0x5e7   : > { %v2869_v61 = vpop.f32.mrb[68].mxu0  ;;  %2295 = vadd.xlane.f32.xlu0 %v4613_v4  ;;  %v4617_v27 = vadd.f32 %v3411_v36, %v2220_v37 }
 0x5e8   : > { %v2870_v31 = vpop.f32.mrb[69].mxu0 }
 0x5e9   : > { %v2871_v28 = vadd.f32 %v2870_v31, %v2869_v61  ;;  %v2872_v55 = vpop.f32.mrb[70].mxu0  ;;  %2297 = vadd.xlane.f32.xlu1 %v4617_v27 }
 0x5ea   : > { %v2873_v41 = vpop.f32.mrb[71].mxu0 }
 0x5eb   : > { %v2225_v35 = vadd.f32 %v2871_v28, %v4608_v52  ;;  %v2874_v49 = vadd.f32 %v2873_v41, %v2872_v55 }
 0x5ed   : > { %v2228_v16 = vadd.f32 %v2874_v49, %v4608_v52  ;;  %v4623_v57 = vadd.f32 %v3412_v33, %v2225_v35 }
 0x5ef   : > { %2299 = vadd.xlane.f32.xlu0 %v4623_v57  ;;  %v2875_v60 = vpop.f32.mrb[72].mxu0  ;;  %v4627_v19 = vadd.f32 %v3413_v14, %v2228_v16  ;;  %v3422_v16 = vld [vmem:[%s3991_s26 + $0x60] sm:$0xff]  ;;  %v3423_v14 = vld [vmem:[%s3991_s26 + $0x68] sm:$0xff] }
 0x5f0   : > { %v2876_v18 = vpop.f32.mrb[73].mxu0 }
 0x5f1   : > { %v2877_v42 = vadd.f32 %v2876_v18, %v2875_v60  ;;  %2301 = vadd.xlane.f32.xlu1 %v4627_v19  ;;  %v2878_v2 = vpop.f32.mrb[74].mxu0 }
 0x5f2   : > { %v2879_v11 = vpop.f32.mrb[75].mxu0 }
 0x5f3   : > { %v2233_v47 = vadd.f32 %v2877_v42, %v4608_v52  ;;  %v2880_v43 = vadd.f32 %v2879_v11, %v2878_v2 }
 0x5f5   : > { %v2236_v3 = vadd.f32 %v2880_v43, %v4608_v52  ;;  %v4633_v50 = vadd.f32 %v3414_v22, %v2233_v47 }
 0x5f7   : > { %v2881_v20 = vpop.f32.mrb[76].mxu0  ;;  %2303 = vadd.xlane.f32.xlu0 %v4633_v50  ;;  %v4637_v12 = vadd.f32 %v3415_v24, %v2236_v3 }
 0x5f8   : > { %v2882_v45 = vpop.f32.mrb[77].mxu0 }
 0x5f9   : > { %v2883_v25 = vadd.f32 %v2882_v45, %v2881_v20  ;;  %v2884_v44 = vpop.f32.mrb[78].mxu0  ;;  %2305 = vadd.xlane.f32.xlu1 %v4637_v12  ;;  %v3424_v20 = vld [vmem:[%s3991_s26 + $0x70] sm:$0xff]  ;;  %v3425_v45 = vld [vmem:[%s3991_s26 + $0x78] sm:$0xff]  ;;  %s2550_s26 = sshll.u32 %s4786_s0, 4  ;;  %s4851_s26 = int_to_ptr.vmem [resolvable:$true] %s2550_s26 }
 0x5fa   : > { %v2885_v58 = vpop.f32.mrb[79].mxu0  ;;  %s3570_s16 = scalar_lea.vmem %s4851_s26, 2048  ;;  %p3577_p13 = scmp.lt.s32.totalorder %s4851_s26, %s3575_s22 }
 0x5fb   : > { %v2241_v38 = vadd.f32 %v2883_v25, %v4608_v52  ;;  %v2886_v54 = vadd.f32 %v2885_v58, %v2884_v44  ;;  %p3571_p4 = scmp.ne.s32.totalorder %s4851_s26, %s3570_s16  ;;  %p3578_p3 = scmp.lt.s32.totalorder %s3576_s4, %s3570_s16 }
 0x5fd   : > { %v2244_v15 = vadd.f32 %v2886_v54, %v4608_v52  ;;  %v4643_v29 = vadd.f32 %v3416_v5, %v2241_v38  ;;  %p3572_p8 = pnand %p3571_p4, %p3883_p10  ;;  %p3579_p5 = por %p3578_p3, %p3577_p13 }
 0x5ff   : > { %2307 = vadd.xlane.f32.xlu0 %v4643_v29  ;;  %v2887_v13 = vpop.f32.mrb[80].mxu0  ;;  %v4647_v6 = vadd.f32 %v3417_v46, %v2244_v15  ;;  %p3573_p1 = pneg %p3572_p8 }
 0x600   : > { %v2888_v30 = vpop.f32.mrb[81].mxu0 }
 0x601   : > { %v2889_v56 = vadd.f32 %v2888_v30, %v2887_v13  ;;  %2309 = vadd.xlane.f32.xlu1 %v4647_v6  ;;  %v2890_v34 = vpop.f32.mrb[82].mxu0  ;;  %p3580_p7 = pnand %p3579_p5, %p3573_p1 }
 0x602   : > { %v2891_v39 = vpop.f32.mrb[83].mxu0 }
 0x603   : > { %v2249_v8 = vadd.f32 %v2889_v56, %v4608_v52  ;;  %v2892_v9 = vadd.f32 %v2891_v39, %v2890_v34 }
 0x605   : > { %v2252_v63 = vadd.f32 %v2892_v9, %v4608_v52  ;;  %v4653_v62 = vadd.f32 %v3418_v0, %v2249_v8 }
 0x607   : > { %v2893_v21 = vpop.f32.mrb[84].mxu0  ;;  %2311 = vadd.xlane.f32.xlu0 %v4653_v62  ;;  %v4657_v59 = vadd.f32 %v3419_v53, %v2252_v63 }
 0x608   : > { %v2894_v10 = vpop.f32.mrb[85].mxu0 }
 0x609   : > { %v2895_v48 = vadd.f32 %v2894_v10, %v2893_v21  ;;  %v2896_v7 = vpop.f32.mrb[86].mxu0  ;;  %2313 = vadd.xlane.f32.xlu1 %v4657_v59 }
 0x60a   : > { %v2897_v32 = vpop.f32.mrb[87].mxu0 }
 0x60b   : > { %v2257_v23 = vadd.f32 %v2895_v48, %v4608_v52  ;;  %v2898_v40 = vadd.f32 %v2897_v32, %v2896_v7 }
 0x60d   : > { %v2260_v17 = vadd.f32 %v2898_v40, %v4608_v52  ;;  %v4663_v26 = vadd.f32 %v3420_v1, %v2257_v23 }
 0x60f   : > { %2315 = vadd.xlane.f32.xlu0 %v4663_v26  ;;  %v2899_v37 = vpop.f32.mrb[88].mxu0  ;;  %v4667_v61 = vadd.f32 %v3421_v51, %v2260_v17 }
 0x610   : > { %v2900_v36 = vpop.f32.mrb[89].mxu0 }
 0x611   : > { %v2901_v31 = vadd.f32 %v2900_v36, %v2899_v37  ;;  %2317 = vadd.xlane.f32.xlu1 %v4667_v61  ;;  %v2902_v28 = vpop.f32.mrb[90].mxu0 }
 0x612   : > { %v2903_v55 = vpop.f32.mrb[91].mxu0 }
 0x613   : > { %v2265_v41 = vadd.f32 %v2901_v31, %v4608_v52  ;;  %v2904_v35 = vadd.f32 %v2903_v55, %v2902_v28 }
 0x615   : > { %v2268_v49 = vadd.f32 %v2904_v35, %v4608_v52  ;;  %v4673_v33 = vadd.f32 %v3422_v16, %v2265_v41 }
 0x617   : > { %v2905_v60 = vpop.f32.mrb[92].mxu0  ;;  %2319 = vadd.xlane.f32.xlu0 %v4673_v33  ;;  %v4677_v18 = vadd.f32 %v3423_v14, %v2268_v49 }
 0x618   : > { %v2906_v42 = vpop.f32.mrb[93].mxu0 }
 0x619   : > { %v2907_v2 = vadd.f32 %v2906_v42, %v2905_v60  ;;  %v2908_v11 = vpop.f32.mrb[94].mxu0  ;;  %2321 = vadd.xlane.f32.xlu1 %v4677_v18 }
 0x61a   : > { %v2909_v47 = vpop.f32.mrb[95].mxu0 }
 0x61b   : > { %v2273_v43 = vadd.f32 %v2907_v2, %v4608_v52  ;;  %v2910_v3 = vadd.f32 %v2909_v47, %v2908_v11 }
 0x61d   : > { %v2276_v22 = vadd.f32 %v2910_v3, %v4608_v52  ;;  %v4683_v24 = vadd.f32 %v3424_v20, %v2273_v43 }
 0x61f   : > { %2323 = vadd.xlane.f32.xlu0 %v4683_v24  ;;  %v4687_v25 = vadd.f32 %v3425_v45, %v2276_v22 }
 0x621   : > { %2325 = vadd.xlane.f32.xlu1 %v4687_v25 }
 0x674   : > { %v2296_v44 = vpop.xlane.xlu0 %2295 }
 0x675   : > { %v2328_v58 = vmul.f32 0.0078125, %v2296_v44 }
 0x676   : > { %v2298_v38 = vpop.xlane.xlu1 %2297 }
 0x677   : > { %v4691_v54 = vsub.f32 %v4613_v4, %v2328_v58  ;;  %v2329_v15 = vmul.f32 0.0078125, %v2298_v38 }
 0x679   : > { %v4694_v5 = vsub.f32 %v4617_v27, %v2329_v15  ;;  %v2360_v52 = vmul.f32 %v4691_v54, %v4691_v54 }
 0x67b   : > { %2376 = vadd.xlane.f32.xlu0 %v2360_v52  ;;  %v2361_v13 = vmul.f32 %v4694_v5, %v4694_v5 }
 0x67c   : > { %v2300_v46 = vpop.xlane.xlu0 %2299 }
 0x67d   : > { %v2330_v30 = vmul.f32 0.0078125, %v2300_v46  ;;  %2378 = vadd.xlane.f32.xlu1 %v2361_v13 }
 0x67e   : > { %v2302_v56 = vpop.xlane.xlu1 %2301 }
 0x67f   : > { %v4701_v34 = vsub.f32 %v4623_v57, %v2330_v30  ;;  %v2331_v4 = vmul.f32 0.0078125, %v2302_v56 }
 0x681   : > { %v4704_v39 = vsub.f32 %v4627_v19, %v2331_v4  ;;  %v2362_v27 = vmul.f32 %v4701_v34, %v4701_v34 }
 0x683   : > { %2380 = vadd.xlane.f32.xlu0 %v2362_v27  ;;  %v2363_v8 = vmul.f32 %v4704_v39, %v4704_v39 }
 0x684   : > { %v2304_v9 = vpop.xlane.xlu0 %2303 }
 0x685   : > { %v2332_v63 = vmul.f32 0.0078125, %v2304_v9  ;;  %2382 = vadd.xlane.f32.xlu1 %v2363_v8 }
 0x686   : > { %v2306_v0 = vpop.xlane.xlu1 %2305 }
 0x687   : > { %v4711_v21 = vsub.f32 %v4633_v50, %v2332_v63  ;;  %v2333_v57 = vmul.f32 0.0078125, %v2306_v0  ;;  %v4773_v63 = vld [vmem:[%s4911_s8] ss:$0 sm:$0xff] }
 0x689   : > { %v4714_v53 = vsub.f32 %v4637_v12, %v2333_v57  ;;  %v2364_v19 = vmul.f32 %v4711_v21, %v4711_v21 }
 0x68b   : > { %2384 = vadd.xlane.f32.xlu0 %v2364_v19  ;;  %v2365_v10 = vmul.f32 %v4714_v53, %v4714_v53 }
 0x68c   : > { %v2308_v48 = vpop.xlane.xlu0 %2307 }
 0x68d   : > { %v2334_v7 = vmul.f32 0.0078125, %v2308_v48  ;;  %2386 = vadd.xlane.f32.xlu1 %v2365_v10  ;;  %v4779_v10 = vld [vmem:[%s4953_s29] ss:$0 sm:$0xff] }
 0x68e   : > { %v2310_v32 = vpop.xlane.xlu1 %2309 }
 0x68f   : > { %v4721_v23 = vsub.f32 %v4643_v29, %v2334_v7  ;;  %v2335_v50 = vmul.f32 0.0078125, %v2310_v32 }
 0x691   : > { %v4724_v40 = vsub.f32 %v4647_v6, %v2335_v50  ;;  %v2366_v12 = vmul.f32 %v4721_v23, %v4721_v23 }
 0x693   : > { %2388 = vadd.xlane.f32.xlu0 %v2366_v12  ;;  %v2367_v17 = vmul.f32 %v4724_v40, %v4724_v40 }
 0x694   : > { %v2312_v1 = vpop.xlane.xlu0 %2311 }
 0x695   : > { %v2336_v37 = vmul.f32 0.0078125, %v2312_v1  ;;  %2390 = vadd.xlane.f32.xlu1 %v2367_v17 }
 0x696   : > { %v2314_v51 = vpop.xlane.xlu1 %2313 }
 0x697   : > { %v4731_v36 = vsub.f32 %v4653_v62, %v2336_v37  ;;  %v2337_v29 = vmul.f32 0.0078125, %v2314_v51 }
 0x699   : > { %v4734_v31 = vsub.f32 %v4657_v59, %v2337_v29  ;;  %v2368_v6 = vmul.f32 %v4731_v36, %v4731_v36 }
 0x69b   : > { %2392 = vadd.xlane.f32.xlu0 %v2368_v6  ;;  %v2369_v28 = vmul.f32 %v4734_v31, %v4734_v31 }
 0x69c   : > { %v2316_v55 = vpop.xlane.xlu0 %2315 }
 0x69d   : > { %v2338_v41 = vmul.f32 0.0078125, %v2316_v55  ;;  %2394 = vadd.xlane.f32.xlu1 %v2369_v28 }
 0x69e   : > { %v2318_v35 = vpop.xlane.xlu1 %2317 }
 0x69f   : > { %v4741_v49 = vsub.f32 %v4663_v26, %v2338_v41  ;;  %v2339_v62 = vmul.f32 0.0078125, %v2318_v35 }
 0x6a1   : > { %v4744_v16 = vsub.f32 %v4667_v61, %v2339_v62  ;;  %v2370_v59 = vmul.f32 %v4741_v49, %v4741_v49 }
 0x6a3   : > { %2396 = vadd.xlane.f32.xlu0 %v2370_v59  ;;  %v2371_v60 = vmul.f32 %v4744_v16, %v4744_v16 }
 0x6a4   : > { %v2320_v14 = vpop.xlane.xlu0 %2319 }
 0x6a5   : > { %v2340_v42 = vmul.f32 0.0078125, %v2320_v14  ;;  %2398 = vadd.xlane.f32.xlu1 %v2371_v60 }
 0x6a6   : > { %v2322_v2 = vpop.xlane.xlu1 %2321 }
 0x6a7   : > { %v4751_v11 = vsub.f32 %v4673_v33, %v2340_v42  ;;  %v2341_v26 = vmul.f32 0.0078125, %v2322_v2 }
 0x6a9   : > { %v4754_v47 = vsub.f32 %v4677_v18, %v2341_v26  ;;  %v2372_v61 = vmul.f32 %v4751_v11, %v4751_v11 }
 0x6ab   : > { %2400 = vadd.xlane.f32.xlu0 %v2372_v61  ;;  %v2373_v43 = vmul.f32 %v4754_v47, %v4754_v47 }
 0x6ac   : > { %v2324_v3 = vpop.xlane.xlu0 %2323 }
 0x6ad   : > { %v2342_v22 = vmul.f32 0.0078125, %v2324_v3  ;;  %2402 = vadd.xlane.f32.xlu1 %v2373_v43 }
 0x6ae   : > { %v2326_v20 = vpop.xlane.xlu1 %2325 }
 0x6af   : > { %v4761_v45 = vsub.f32 %v4683_v24, %v2342_v22  ;;  %v2343_v33 = vmul.f32 0.0078125, %v2326_v20 }
 0x6b1   : > { %v4764_v44 = vsub.f32 %v4687_v25, %v2343_v33  ;;  %v2374_v18 = vmul.f32 %v4761_v45, %v4761_v45 }
 0x6b3   : > { %2404 = vadd.xlane.f32.xlu0 %v2374_v18  ;;  %v2375_v58 = vmul.f32 %v4764_v44, %v4764_v44 }
 0x6b5   : > { %2406 = vadd.xlane.f32.xlu1 %v2375_v58 }
 0x708   : > { %v2377_v38 = vpop.xlane.xlu0 %2376 }
 0x709   : > { %v2408_v15 = vmul.f32 0.0078125, %v2377_v38 }
 0x70a   : > { %v2379_v52 = vpop.xlane.xlu1 %2378 }
 0x70b   : > { %v2424_v13 = vadd.f32 1e-05, %v2408_v15  ;;  %v2409_v46 = vmul.f32 0.0078125, %v2379_v52 }
 0x70d   : > { %3378 = vrsqrt.f32 %v2424_v13  ;;  %v2425_v24 = vadd.f32 1e-05, %v2409_v46 }
 0x70f   : > { %3380 = vrsqrt.f32 %v2425_v24 }
 0x710   : > { %v2381_v30 = vpop.xlane.xlu0 %2380 }
 0x711   : > { %v2410_v56 = vmul.f32 0.0078125, %v2381_v30 }
 0x712   : > { %v2383_v25 = vpop.xlane.xlu1 %2382 }
 0x713   : > { %v2426_v4 = vadd.f32 1e-05, %v2410_v56  ;;  %v2411_v27 = vmul.f32 0.0078125, %v2383_v25 }
 0x715   : > { %3382 = vrsqrt.f32 %v2426_v4  ;;  %v2427_v8 = vadd.f32 1e-05, %v2411_v27 }
 0x717   : > { %v3379_v9 = vpop.eup %3378  ;;  %3384 = vrsqrt.f32 %v2427_v8 }
 0x718   : > { %v2456_v0 = vmul.f32 %v3379_v9, %v4691_v54  ;;  %v2385_v57 = vpop.xlane.xlu0 %2384 }
 0x719   : > { %v3381_v19 = vpop.eup %3380  ;;  %v2412_v48 = vmul.f32 0.0078125, %v2385_v57 }
 0x71a   : > { %v2479_v7 = vmul.f32 %v4773_v63, %v2456_v0  ;;  %v2457_v32 = vmul.f32 %v3381_v19, %v4694_v5  ;;  %v2387_v50 = vpop.xlane.xlu1 %2386 }
 0x71b   : > { %v2428_v12 = vadd.f32 1e-05, %v2412_v48  ;;  %v2413_v17 = vmul.f32 0.0078125, %v2387_v50 }
 0x71c   : > { %v2502_v1 = vadd.f32 %v4779_v10, %v2479_v7  ;;  %v2480_v37 = vmul.f32 %v4773_v63, %v2457_v32 }
 0x71d   : > { %3386 = vrsqrt.f32 %v2428_v12  ;;  %v2429_v54 = vadd.f32 1e-05, %v2413_v17 }
 0x71e   : > { %2518 = vst [vmem:[%s4786_s0] sm:$0xff] %v2502_v1  ;;  %v2503_v51 = vadd.f32 %v4779_v10, %v2480_v37 }
 0x71f   : > { %v3383_v29 = vpop.eup %3382  ;;  %3388 = vrsqrt.f32 %v2429_v54 }
 0x720   : > { %2519 = vst [vmem:[%s4786_s0 + $0x8] sm:$0xff] %v2503_v51  ;;  %v2458_v5 = vmul.f32 %v3383_v29, %v4701_v34  ;;  %v2389_v6 = vpop.xlane.xlu0 %2388 }
 0x721   : > { %v3385_v28 = vpop.eup %3384  ;;  %v2414_v55 = vmul.f32 0.0078125, %v2389_v6 }
 0x722   : > { %v2481_v41 = vmul.f32 %v4773_v63, %v2458_v5  ;;  %v2459_v35 = vmul.f32 %v3385_v28, %v4704_v39  ;;  %v2391_v62 = vpop.xlane.xlu1 %2390 }
 0x723   : > { %v2430_v59 = vadd.f32 1e-05, %v2414_v55  ;;  %v2415_v60 = vmul.f32 0.0078125, %v2391_v62 }
 0x724   : > { %v2504_v14 = vadd.f32 %v4779_v10, %v2481_v41  ;;  %v2482_v42 = vmul.f32 %v4773_v63, %v2459_v35 }
 0x725   : > { %3390 = vrsqrt.f32 %v2430_v59  ;;  %v2431_v2 = vadd.f32 1e-05, %v2415_v60 }
 0x726   : > { %2520 = vst [vmem:[%s4786_s0 + $0x10] sm:$0xff] %v2504_v14  ;;  %v2505_v34 = vadd.f32 %v4779_v10, %v2482_v42 }
 0x727   : > { %v3387_v26 = vpop.eup %3386  ;;  %3392 = vrsqrt.f32 %v2431_v2 }
 0x728   : > { %2521 = vst [vmem:[%s4786_s0 + $0x18] sm:$0xff] %v2505_v34  ;;  %v2460_v61 = vmul.f32 %v3387_v26, %v4711_v21  ;;  %v2393_v43 = vpop.xlane.xlu0 %2392 }
 0x729   : > { %v3389_v39 = vpop.eup %3388  ;;  %v2416_v3 = vmul.f32 0.0078125, %v2393_v43 }
 0x72a   : > { %v2483_v22 = vmul.f32 %v4773_v63, %v2460_v61  ;;  %v2461_v20 = vmul.f32 %v3389_v39, %v4714_v53  ;;  %v2395_v33 = vpop.xlane.xlu1 %2394 }
 0x72b   : > { %v2432_v18 = vadd.f32 1e-05, %v2416_v3  ;;  %v2417_v58 = vmul.f32 0.0078125, %v2395_v33 }
 0x72c   : > { %v2506_v38 = vadd.f32 %v4779_v10, %v2483_v22  ;;  %v2484_v15 = vmul.f32 %v4773_v63, %v2461_v20 }
 0x72d   : > { %3394 = vrsqrt.f32 %v2432_v18  ;;  %v2433_v52 = vadd.f32 1e-05, %v2417_v58 }
 0x72e   : > { %2522 = vst [vmem:[%s4786_s0 + $0x20] sm:$0xff] %v2506_v38  ;;  %v2507_v21 = vadd.f32 %v4779_v10, %v2484_v15 }
 0x72f   : > { %v3391_v13 = vpop.eup %3390  ;;  %3396 = vrsqrt.f32 %v2433_v52 }
 0x730   : > { %2523 = vst [vmem:[%s4786_s0 + $0x28] sm:$0xff] %v2507_v21  ;;  %v2462_v46 = vmul.f32 %v3391_v13, %v4721_v23  ;;  %v2397_v24 = vpop.xlane.xlu0 %2396 }
 0x731   : > { %v3393_v53 = vpop.eup %3392  ;;  %v2418_v30 = vmul.f32 0.0078125, %v2397_v24 }
 0x732   : > { %v2485_v56 = vmul.f32 %v4773_v63, %v2462_v46  ;;  %v2463_v25 = vmul.f32 %v3393_v53, %v4724_v40  ;;  %v2399_v4 = vpop.xlane.xlu1 %2398 }
 0x733   : > { %v2434_v27 = vadd.f32 1e-05, %v2418_v30  ;;  %v2419_v8 = vmul.f32 0.0078125, %v2399_v4 }
 0x734   : > { %v2508_v9 = vadd.f32 %v4779_v10, %v2485_v56  ;;  %v2486_v0 = vmul.f32 %v4773_v63, %v2463_v25 }
 0x735   : > { %3398 = vrsqrt.f32 %v2434_v27  ;;  %v2435_v57 = vadd.f32 1e-05, %v2419_v8 }
 0x736   : > { %2524 = vst [vmem:[%s4786_s0 + $0x30] sm:$0xff] %v2508_v9  ;;  %v2509_v23 = vadd.f32 %v4779_v10, %v2486_v0 }
 0x737   : > { %v3395_v19 = vpop.eup %3394  ;;  %3400 = vrsqrt.f32 %v2435_v57 }
 0x738   : > { %2525 = vst [vmem:[%s4786_s0 + $0x38] sm:$0xff] %v2509_v23  ;;  %v2464_v48 = vmul.f32 %v3395_v19, %v4731_v36  ;;  %v2401_v7 = vpop.xlane.xlu0 %2400 }
 0x739   : > { %v3397_v40 = vpop.eup %3396  ;;  %v2420_v32 = vmul.f32 0.0078125, %v2401_v7 }
 0x73a   : > { %v2487_v50 = vmul.f32 %v4773_v63, %v2464_v48  ;;  %v2465_v12 = vmul.f32 %v3397_v40, %v4734_v31  ;;  %v2403_v17 = vpop.xlane.xlu1 %2402 }
 0x73b   : > { %v2436_v1 = vadd.f32 1e-05, %v2420_v32  ;;  %v2421_v37 = vmul.f32 0.0078125, %v2403_v17 }
 0x73c   : > { %v2510_v54 = vadd.f32 %v4779_v10, %v2487_v50  ;;  %v2488_v51 = vmul.f32 %v4773_v63, %v2465_v12 }
 0x73d   : > { %3402 = vrsqrt.f32 %v2436_v1  ;;  %v2437_v29 = vadd.f32 1e-05, %v2421_v37 }
 0x73e   : > { %2526 = vst [vmem:[%s4786_s0 + $0x40] sm:$0xff] %v2510_v54  ;;  %v2511_v36 = vadd.f32 %v4779_v10, %v2488_v51 }
 0x73f   : > { %v3399_v5 = vpop.eup %3398  ;;  %3404 = vrsqrt.f32 %v2437_v29 }
 0x740   : > { %2527 = vst [vmem:[%s4786_s0 + $0x48] sm:$0xff] %v2511_v36  ;;  %v2466_v6 = vmul.f32 %v3399_v5, %v4741_v49  ;;  %v2405_v28 = vpop.xlane.xlu0 %2404 }
 0x741   : > { %v3401_v31 = vpop.eup %3400  ;;  %v2422_v55 = vmul.f32 0.0078125, %v2405_v28 }
 0x742   : > { %v2489_v41 = vmul.f32 %v4773_v63, %v2466_v6  ;;  %v2467_v35 = vmul.f32 %v3401_v31, %v4744_v16  ;;  %v2407_v62 = vpop.xlane.xlu1 %2406 }
 0x743   : > { %v2438_v59 = vadd.f32 1e-05, %v2422_v55  ;;  %v2423_v60 = vmul.f32 0.0078125, %v2407_v62 }
 0x744   : > { %v2512_v14 = vadd.f32 %v4779_v10, %v2489_v41  ;;  %v2490_v42 = vmul.f32 %v4773_v63, %v2467_v35 }
 0x745   : > { %3406 = vrsqrt.f32 %v2438_v59  ;;  %v2439_v2 = vadd.f32 1e-05, %v2423_v60 }
 0x746   : > { %2528 = vst [vmem:[%s4786_s0 + $0x50] sm:$0xff] %v2512_v14  ;;  %v2513_v49 = vadd.f32 %v4779_v10, %v2490_v42 }
 0x747   : > { %v3403_v34 = vpop.eup %3402  ;;  %3408 = vrsqrt.f32 %v2439_v2 }
 0x748   : > { %2529 = vst [vmem:[%s4786_s0 + $0x58] sm:$0xff] %v2513_v49  ;;  %v2468_v16 = vmul.f32 %v3403_v34, %v4751_v11 }
 0x749   : > { %v3405_v26 = vpop.eup %3404 }
 0x74a   : > { %v2491_v61 = vmul.f32 %v4773_v63, %v2468_v16  ;;  %v2469_v43 = vmul.f32 %v3405_v26, %v4754_v47 }
 0x74c   : > { %v2514_v39 = vadd.f32 %v4779_v10, %v2491_v61  ;;  %v2492_v3 = vmul.f32 %v4773_v63, %v2469_v43 }
 0x74e   : > { %2530 = vst [vmem:[%s4786_s0 + $0x60] sm:$0xff] %v2514_v39  ;;  %v2515_v22 = vadd.f32 %v4779_v10, %v2492_v3 }
 0x74f   : > { %v3407_v20 = vpop.eup %3406 }
 0x750   : > { %2531 = vst [vmem:[%s4786_s0 + $0x68] sm:$0xff] %v2515_v22  ;;  %v2470_v33 = vmul.f32 %v3407_v20, %v4761_v45 }
 0x751   : > { %v3409_v11 = vpop.eup %3408 }
 0x752   : > { %v2493_v18 = vmul.f32 %v4773_v63, %v2470_v33  ;;  %v2471_v47 = vmul.f32 %v3409_v11, %v4764_v44 }
 0x754   : > { %v2516_v58 = vadd.f32 %v4779_v10, %v2493_v18  ;;  %v2494_v38 = vmul.f32 %v4773_v63, %v2471_v47 }
 0x756   : > { %2532 = vst [vmem:[%s4786_s0 + $0x70] sm:$0xff] %v2516_v58  ;;  %v2517_v45 = vadd.f32 %v4779_v10, %v2494_v38 }
 0x758   : > { %2533 = vst [vmem:[%s4786_s0 + $0x78] sm:$0xff] %v2517_v45 }
 0x759   : > { %3583 = shalt.err (!%p3580_p7)
}
 0x75a   : > { %s3584_s6 = scalar_lea.hbm %s4849_s19, 2048  ;;  %s3588_s30 = scalar_lea.hbm %s4955_s27, 4096 }
 0x75b   : > { %p3585_p12 = scmp.ne.s32.totalorder %s4849_s19, %s3584_s6  ;;  %p3589_p9 = scmp.lt.u32.totalorder %s4849_s19, %s4955_s27 }
 0x75c   : > { %p3590_p0 = scmp.lt.u32.totalorder %s3588_s30, %s3584_s6  ;;  %p3592_p4 = scmp.lt.u32.totalorder %s3584_s6, %s4849_s19 }
 0x75d   : > { %p3586_p6 = pnand %p3585_p12, %p3883_p10 }
 0x75e   : > { %p3591_p2 = por %p3590_p0, %p3589_p9 }
 0x75f   : > { %p3587_p11 = pneg %p3586_p6 }
 0x760   : > { %p3593_p8 = por %p3592_p4, %p3591_p2 }
 0x762   : > { %p3594_p1 = pnand %p3593_p8, %p3587_p11 }
 0x764   : > { %3597 = shalt.err (!%p3594_p1)
}
 0x765   : > { %s3679_s12 = smov 128   ;;  %s3680_s2 = smov 8  }
 0x766   : > { %3071 = dma.vmem_to_hbm [thread:$0]  (%p3883_p10), %s4851_s26, 2048, %s4849_s19, %s2535_s21, %s3679_s12, %s3679_s12, %s3680_s2  }
 0x767 PF: > { %s4956_s23 = sld [smem:[#allocation18_spill]]  ;;  %s4957_s10 = sld [smem:[#allocation20_spill]] }
 0x768   : > { %p4959_p3 = scmp.ge.s32.totalorder %s3664_s18, 2 }
 0x76d   : > { %s2565_s16 = sand.u32 1, %s4956_s23   ;;  %p4958_p13 = scmp.ne.s32.totalorder %s4957_s10, 0 }
 0x76e   : > { %s2566_s28 = scalar_lea.sflag [#allocation5], %s2565_s16 }
 0x76f   : > { %p3091_p5 = pnand %p4959_p3, %p4958_p13 }
 0x771   : > { %3639 = dma.done.wait (!%p3091_p5), %s2566_s28, 2048  }
 0x772   : > { %3641 = vsyncadd (!%p3091_p5), %s2566_s28, 4294965248  ;;  %s30_s18 = sadd.s32 1, %s3664_s18   ;;  %s4960_s13 = smov %s3648_s14 }
 0x773   : > { %p27_p7 = scmp.ge.s32.totalorder %s30_s18, 4   ;;  %s4961_s14 = smov %s3652_s15 }
 0x774   : > { %s4962_s15 = smov %s3895_s20  ;;  %s4963_s16 = smov %s3660_s17 }
 0x775   : > { %s4964_s17 = smov %s4966_s9  ;;  %29 = sbr.rel (!%p27_p7) target bundleno = 16 (0x10), region = 134 }
 0x77c   :  { %2571 = vsyncpa [#allocation4], 1 }
 0x77d   :  { %2573 = vsyncpa [#allocation4 + $0x1], 1 }
 0x77e   :  { %2574 = vsyncpa [#allocation7], 1 }
 0x77f   :  { %2576 = vsyncpa [#allocation7 + $0x1], 1 }
 0x780   :  { %2577 = vsyncpa [#allocation10], 1 }
 0x781   :  { %2578 = vsyncpa [#allocation5], 1 }
 0x782   :  { %2580 = vsyncpa [#allocation5 + $0x1], 1 }

</bundles_post_ra>
